<compile_context>
chip_gen: v7x
topology: tpu7x:2x2x1
jax: 0.10.0
libtpu: 0.0.40
codegen_flags: <defaults>
</compile_context>

<pallas_src>
import jax
import jax.numpy as jnp
from jax.experimental import pallas as pl
from jax.experimental.pallas import tpu as pltpu

HEADS = 8
DIM_HEAD = 64
INNER = HEADS * DIM_HEAD          # inner_dim = 512
LN_EPS = 1e-5                     # nn.LayerNorm default eps
NEG_INF = -1.0e9                  # the module's "large_negative"


def _attention_kernel(x_ref, mk_ref, mq_ref, gamma_ref, beta_ref,
                      wqkv_ref, wo_ref, o_ref):
    # Grid = (batch, query-tile).  x_ref holds the full sequence for this batch
    # element (needed for the LayerNorm-ed K/V); o_ref holds one query tile.
    tq = o_ref.shape[1]
    x = x_ref[0].astype(jnp.float32)                      # (N, D); bf16 inputs upcast here
    N, D = x.shape
    gamma = gamma_ref[...]                                # (1, D)
    beta = beta_ref[...]                                  # (1, D)

    # --- LayerNorm(dim), f32, over the full sequence (source of K / V) ---
    mean = jnp.mean(x, axis=-1, keepdims=True)
    xc = x - mean
    var = jnp.mean(xc * xc, axis=-1, keepdims=True)
    xn_bf = ((xc * jax.lax.rsqrt(var + LN_EPS)) * gamma + beta).astype(jnp.bfloat16)

    # --- query-tile activations (static trace-time branch) ---
    if tq == N:
        xq_bf = xn_bf
    else:
        # TODO(synk): for very long N, flash-style key tiling (online softmax) would
        # also avoid re-projecting K/V once per query tile.
        q0 = pl.multiple_of(pl.program_id(1) * tq, 8)
        xq = x_ref[0, pl.ds(q0, tq), :].astype(jnp.float32)
        qmean = jnp.mean(xq, axis=-1, keepdims=True)
        xqc = xq - qmean
        qvar = jnp.mean(xqc * xqc, axis=-1, keepdims=True)
        xq_bf = ((xqc * jax.lax.rsqrt(qvar + LN_EPS)) * gamma + beta).astype(jnp.bfloat16)

    keep_k = mk_ref[0] > 0.0                              # (1, N) key mask, hoisted

    # --- per-head attention, unrolled.  Every matmul is a plain 2-D MXU dot reusing
    #     the VMEM-resident xn/xq LHS (no (H,N,D) broadcast); per-head weights are
    #     static major-axis slices of the stacked slab; the head reduction of the
    #     output projection is accumulated in f32 (no (H,N,D) f32 intermediate); the
    #     per-head exp (EUP) overlaps the MXU work of neighbouring heads.
    y = jnp.zeros((tq, D), jnp.float32)
    for h in range(HEADS):
        q_h = jnp.dot(xq_bf, wqkv_ref[h],
                      preferred_element_type=jnp.float32).astype(jnp.bfloat16)   # (tq, d)
        k_h = jnp.dot(xn_bf, wqkv_ref[HEADS + h],
                      preferred_element_type=jnp.float32).astype(jnp.bfloat16)   # (N, d)
        v_h = jnp.dot(xn_bf, wqkv_ref[2 * HEADS + h],
                      preferred_element_type=jnp.float32).astype(jnp.bfloat16)   # (N, d)

        # scores: contract the last dim of both operands (no explicit K transpose)
        s = jnp.einsum('qd,kd->qk', q_h, k_h,
                       preferred_element_type=jnp.float32)                       # (tq, N) f32
        s = jnp.where(keep_k, s, NEG_INF)                 # masked_fill on keys

        # softmax over keys (f32); normalisation deferred until after P @ V
        m = jnp.max(s, axis=-1, keepdims=True)
        e = jnp.exp(s - m)
        inv = pl.reciprocal(jnp.sum(e, axis=-1, keepdims=True), approx=True)      # (tq, 1)
        ctx = jnp.dot(e.astype(jnp.bfloat16), v_h,
                      preferred_element_type=jnp.float32)                         # (tq, d)
        ctx = (ctx * inv).astype(jnp.bfloat16)            # nn.Dropout(0.0) == identity

        # output projection; head reduction fused into the f32 accumulator
        y = y + jnp.dot(ctx, wo_ref[h], preferred_element_type=jnp.float32)       # (tq, D)

    # --- query-row masking ---
    # TODO(synk): the original `out.masked_fill(~mask.unsqueeze(2), 0)` only
    # broadcasts when batch == heads; implemented as the intended per-query masking,
    # applied to y (equivalent since to_out has no bias).
    y = jnp.where(mq_ref[0] > 0.0, y, 0.0)                # (tq, 1) sublane mask
    o_ref[0] = y.astype(o_ref.dtype)


def attention_forward(x, mask, gamma, beta, w_qkv, w_out, q_tile=512):
    """x: (B, N, D) f32/bf16; mask: (B, N) bool; w_qkv: (D, 3*INNER); w_out: (INNER, D)."""
    B, N, D = x.shape
    scale = DIM_HEAD ** -0.5                 # 0.125, exact in bf16

    # Query tiling: second "parallel" grid axis (keeps both v7x TensorCores busy and
    # keeps the per-step score tensor at O(tq * N) instead of O(N^2)).
    tq = q_tile if (N > q_tile and N % q_tile == 0) else N
    n_q = N // tq

    # TODO(synk): for production shapes, pad N to a multiple of 8 and D to a multiple
    # of 128 here (padded positions handled by the mask) so output stores are
    # lane-dense; the toy D=32 case below runs with masked partial stores.
    mask_f = mask.astype(jnp.float32)
    mask_k = mask_f.reshape(B, 1, N)         # lane-oriented key mask
    mask_q = mask_f.reshape(B, N, 1)         # sublane-oriented query-row mask

    # One stacked, head-major bf16 weight slab: [W_q*scale | W_k | W_v] -> (3H, D, d).
    wq, wk, wv = jnp.split(w_qkv, 3, axis=-1)
    to_heads = lambda w: w.reshape(D, HEADS, DIM_HEAD).transpose(1, 0, 2)
    w_qkv_h = jnp.concatenate(
        [to_heads(wq * scale), to_heads(wk), to_heads(wv)], axis=0).astype(jnp.bfloat16)
    wo_h = w_out.reshape(HEADS, DIM_HEAD, D).astype(jnp.bfloat16)        # (H, d, D)

    gamma2 = gamma.reshape(1, D).astype(jnp.float32)
    beta2 = beta.reshape(1, D).astype(jnp.float32)

    # VMEM budget derived from the actual generation (64 MiB physical on v7x,
    # 128 MiB on v5e/v6e): ~60% of physical, capped at 48 MiB.
    try:
        vmem_cap = getattr(pltpu.get_tpu_info(), "vmem_capacity_bytes",
                           128 * 1024 * 1024)
    except Exception:
        vmem_cap = 128 * 1024 * 1024
    vmem_limit = min(48 * 1024 * 1024, int(0.6 * vmem_cap))

    # NOTE: the weight / gamma / beta blocks are grid-invariant, so Pallas skips
    # their re-DMA between grid steps.  pipeline_mode=pl.Buffered(1) would also halve
    # their VMEM footprint; left out pending verification on the target jax version.
    grid_spec = pltpu.PrefetchScalarGridSpec(
        num_scalar_prefetch=0,
        grid=(B, n_q),
        in_specs=[
            pl.BlockSpec((1, N, D), lambda b, q: (b, 0, 0)),                 # x (full sequence)
            pl.BlockSpec((1, 1, N), lambda b, q: (b, 0, 0)),                 # key mask
            pl.BlockSpec((1, tq, 1), lambda b, q: (b, q, 0)),                # query-mask tile
            pl.BlockSpec((1, D), lambda b, q: (0, 0)),                       # LN gamma
            pl.BlockSpec((1, D), lambda b, q: (0, 0)),                       # LN beta
            pl.BlockSpec((3 * HEADS, D, DIM_HEAD), lambda b, q: (0, 0, 0)),  # Wq|Wk|Wv (pre-scaled q)
            pl.BlockSpec((HEADS, DIM_HEAD, D), lambda b, q: (0, 0, 0)),      # W_out
        ],
        out_specs=pl.BlockSpec((1, tq, D), lambda b, q: (b, q, 0)),
    )
    return pl.pallas_call(
        _attention_kernel,
        out_shape=jax.ShapeDtypeStruct((B, N, D), jnp.float32),
        grid_spec=grid_spec,
        compiler_params=pltpu.CompilerParams(
            dimension_semantics=("parallel", "parallel"),
            vmem_limit_bytes=vmem_limit),
    )(x, mask_k, mask_q, gamma2, beta2, w_qkv_h, wo_h)


def attention_reference(x, mask, gamma, beta, w_qkv, w_out):
    """Pure-JAX f32 reference mirroring the PyTorch forward."""
    B, N, D = x.shape
    mean = jnp.mean(x, -1, keepdims=True)
    var = jnp.mean((x - mean) ** 2, -1, keepdims=True)
    xn = (x - mean) / jnp.sqrt(var + LN_EPS) * gamma + beta
    qkv = xn @ w_qkv
    q, k, v = jnp.split(qkv, 3, axis=-1)
    to_heads = lambda t: t.reshape(B, N, HEADS, DIM_HEAD).transpose(0, 2, 1, 3)
    q, k, v = map(to_heads, (q, k, v))
    dots = jnp.einsum("bhnd,bhmd->bhnm", q, k) * (DIM_HEAD ** -0.5)
    dots = jnp.where(mask[:, None, None, :], dots, NEG_INF)
    attn = jax.nn.softmax(dots, axis=-1)
    out = jnp.einsum("bhnm,bhmd->bhnd", attn, v)
    out = jnp.where(mask[:, None, :, None], out, 0.0)
    out = out.transpose(0, 2, 1, 3).reshape(B, N, INNER)
    return out @ w_out


if __name__ == "__main__":
    B, N, D = 2, 8, 32
    key = jax.random.PRNGKey(0)
    kx, kq, ko, kg, kb = jax.random.split(key, 5)

    x = jax.random.normal(kx, (B, N, D), dtype=jnp.float32)
    mask = jnp.array([[True] * N, [True] * 5 + [False] * 3], dtype=bool)

    # Deterministic synthetic parameters (shapes from the module's __init__).
    w_qkv = jax.random.normal(kq, (D, 3 * INNER), dtype=jnp.float32) / jnp.sqrt(D)
    w_out = jax.random.normal(ko, (INNER, D), dtype=jnp.float32) / jnp.sqrt(INNER)
    gamma = 1.0 + 0.1 * jax.random.normal(kg, (D,), dtype=jnp.float32)
    beta = 0.1 * jax.random.normal(kb, (D,), dtype=jnp.float32)

    y = attention_forward(x, mask, gamma, beta, w_qkv, w_out)
    y = jax.block_until_ready(y)

    y_ref = attention_reference(x, mask, gamma, beta, w_qkv, w_out)
    assert y.shape == (B, N, D)
    # bf16 MXU operands + approx reciprocal -> loose tolerance vs. the f32 reference.
    max_err = float(jnp.max(jnp.abs(y - y_ref)))
    assert jnp.allclose(y, y_ref, atol=5e-2, rtol=5e-2), max_err
    print("KERNEL_OK")
</pallas_src>

<mosaic_0001>
module attributes {stable_mosaic.version = 11 : i64} {
  func.func @_attention_kernel(%arg0: i32, %arg1: i32, %arg2: memref<1x8x32xf32, #tpu.memory_space<vmem>>, %arg3: memref<1x1x8xf32, #tpu.memory_space<vmem>>, %arg4: memref<1x8x1xf32, #tpu.memory_space<vmem>>, %arg5: memref<1x32xf32, #tpu.memory_space<vmem>>, %arg6: memref<1x32xf32, #tpu.memory_space<vmem>>, %arg7: memref<24x32x64xbf16, #tpu.memory_space<vmem>>, %arg8: memref<8x64x32xbf16, #tpu.memory_space<vmem>>, %arg9: memref<1x8x32xf32, #tpu.memory_space<vmem>>) attributes {dimension_semantics = [#tpu.dimension_semantics<parallel>, #tpu.dimension_semantics<parallel>], iteration_bounds = array<i64: 2, 1>, scalar_prefetch = 0 : i64, scratch_operands = 0 : i64, tpu.core_type = #tpu.core_type<tc>, window_params = [{transform_indices = @transform_0, window_bounds = array<i64: 1, 8, 32>}, {transform_indices = @transform_1, window_bounds = array<i64: 1, 1, 8>}, {transform_indices = @transform_2, window_bounds = array<i64: 1, 8, 1>}, {pipeline_mode = #tpu.pipeline_mode<synchronous>, transform_indices = @transform_3, window_bounds = array<i64: 1, 32>}, {pipeline_mode = #tpu.pipeline_mode<synchronous>, transform_indices = @transform_4, window_bounds = array<i64: 1, 32>}, {pipeline_mode = #tpu.pipeline_mode<synchronous>, transform_indices = @transform_5, window_bounds = array<i64: 24, 32, 64>}, {pipeline_mode = #tpu.pipeline_mode<synchronous>, transform_indices = @transform_6, window_bounds = array<i64: 8, 64, 32>}, {transform_indices = @transform_7, window_bounds = array<i64: 1, 8, 32>}]} {
    %c0 = arith.constant 0 : index
    %c0_0 = arith.constant 0 : index
    %c0_1 = arith.constant 0 : index
    %0 = vector.load %arg2[%c0, %c0_0, %c0_1] : memref<1x8x32xf32, #tpu.memory_space<vmem>>, vector<1x8x32xf32>
    %1 = vector.shape_cast %0 : vector<1x8x32xf32> to vector<8x32xf32>
    %c0_2 = arith.constant 0 : index
    %c0_3 = arith.constant 0 : index
    %2 = vector.load %arg5[%c0_2, %c0_3] : memref<1x32xf32, #tpu.memory_space<vmem>>, vector<1x32xf32>
    %c0_4 = arith.constant 0 : index
    %c0_5 = arith.constant 0 : index
    %3 = vector.load %arg6[%c0_4, %c0_5] : memref<1x32xf32, #tpu.memory_space<vmem>>, vector<1x32xf32>
    %cst = arith.constant dense<0.000000e+00> : vector<8xf32>
    %4 = vector.multi_reduction <add>, %1, %cst [1] : vector<8x32xf32> to vector<8xf32>
    %5 = vector.shape_cast %4 : vector<8xf32> to vector<8x1xf32>
    %cst_6 = arith.constant 3.200000e+01 : f32
    %6 = vector.broadcast %cst_6 : f32 to vector<8x1xf32>
    %7 = arith.divf %5, %6 : vector<8x1xf32>
    %8 = vector.broadcast %7 : vector<8x1xf32> to vector<8x32xf32>
    %9 = arith.subf %1, %8 : vector<8x32xf32>
    %10 = arith.mulf %9, %9 : vector<8x32xf32>
    %cst_7 = arith.constant dense<0.000000e+00> : vector<8xf32>
    %11 = vector.multi_reduction <add>, %10, %cst_7 [1] : vector<8x32xf32> to vector<8xf32>
    %12 = vector.shape_cast %11 : vector<8xf32> to vector<8x1xf32>
    %cst_8 = arith.constant 3.200000e+01 : f32
    %13 = vector.broadcast %cst_8 : f32 to vector<8x1xf32>
    %14 = arith.divf %12, %13 : vector<8x1xf32>
    %cst_9 = arith.constant 9.99999974E-6 : f32
    %15 = vector.broadcast %cst_9 : f32 to vector<8x1xf32>
    %16 = arith.addf %14, %15 : vector<8x1xf32>
    %17 = math.rsqrt %16 : vector<8x1xf32>
    %18 = vector.broadcast %17 : vector<8x1xf32> to vector<8x32xf32>
    %19 = arith.mulf %9, %18 : vector<8x32xf32>
    %20 = vector.broadcast %2 : vector<1x32xf32> to vector<8x32xf32>
    %21 = arith.mulf %19, %20 : vector<8x32xf32>
    %22 = vector.broadcast %3 : vector<1x32xf32> to vector<8x32xf32>
    %23 = arith.addf %21, %22 : vector<8x32xf32>
    %24 = arith.truncf %23 : vector<8x32xf32> to vector<8x32xbf16>
    %c0_10 = arith.constant 0 : index
    %c0_11 = arith.constant 0 : index
    %c0_12 = arith.constant 0 : index
    %25 = vector.load %arg3[%c0_10, %c0_11, %c0_12] : memref<1x1x8xf32, #tpu.memory_space<vmem>>, vector<1x1x8xf32>
    %26 = vector.shape_cast %25 : vector<1x1x8xf32> to vector<1x8xf32>
    %cst_13 = arith.constant 0.000000e+00 : f32
    %27 = vector.broadcast %cst_13 : f32 to vector<1x8xf32>
    %28 = arith.cmpf ogt, %26, %27 : vector<1x8xf32>
    %cst_14 = arith.constant 0.000000e+00 : f32
    %29 = vector.broadcast %cst_14 : f32 to vector<8x32xf32>
    %c0_15 = arith.constant 0 : index
    %c0_16 = arith.constant 0 : index
    %c0_17 = arith.constant 0 : index
    %30 = vector.load %arg7[%c0_15, %c0_16, %c0_17] : memref<24x32x64xbf16, #tpu.memory_space<vmem>>, vector<1x32x64xbf16>
    %31 = vector.shape_cast %30 : vector<1x32x64xbf16> to vector<32x64xbf16>
    %cst_18 = arith.constant dense<0.000000e+00> : vector<8x64xf32>
    %32 = tpu.matmul %24, %31, %cst_18 {dimension_numbers = #tpu.dot_dimension_numbers<[1], [0], [0], [1], [0, 0, 1, 1], [], []>} : vector<8x32xbf16>, vector<32x64xbf16>, vector<8x64xf32> -> vector<8x64xf32>
    %33 = arith.truncf %32 : vector<8x64xf32> to vector<8x64xbf16>
    %c8 = arith.constant 8 : index
    %c0_19 = arith.constant 0 : index
    %c0_20 = arith.constant 0 : index
    %34 = vector.load %arg7[%c8, %c0_19, %c0_20] : memref<24x32x64xbf16, #tpu.memory_space<vmem>>, vector<1x32x64xbf16>
    %35 = vector.shape_cast %34 : vector<1x32x64xbf16> to vector<32x64xbf16>
    %cst_21 = arith.constant dense<0.000000e+00> : vector<8x64xf32>
    %36 = tpu.matmul %24, %35, %cst_21 {dimension_numbers = #tpu.dot_dimension_numbers<[1], [0], [0], [1], [0, 0, 1, 1], [], []>} : vector<8x32xbf16>, vector<32x64xbf16>, vector<8x64xf32> -> vector<8x64xf32>
    %37 = arith.truncf %36 : vector<8x64xf32> to vector<8x64xbf16>
    %c16 = arith.constant 16 : index
    %c0_22 = arith.constant 0 : index
    %c0_23 = arith.constant 0 : index
    %38 = vector.load %arg7[%c16, %c0_22, %c0_23] : memref<24x32x64xbf16, #tpu.memory_space<vmem>>, vector<1x32x64xbf16>
    %39 = vector.shape_cast %38 : vector<1x32x64xbf16> to vector<32x64xbf16>
    %cst_24 = arith.constant dense<0.000000e+00> : vector<8x64xf32>
    %40 = tpu.matmul %24, %39, %cst_24 {dimension_numbers = #tpu.dot_dimension_numbers<[1], [0], [0], [1], [0, 0, 1, 1], [], []>} : vector<8x32xbf16>, vector<32x64xbf16>, vector<8x64xf32> -> vector<8x64xf32>
    %41 = arith.truncf %40 : vector<8x64xf32> to vector<8x64xbf16>
    "tpu.trace_start"() <{level = 10 : i32, message = "qd,kd->qk"}> : () -> ()
    %cst_25 = arith.constant dense<0.000000e+00> : vector<8x8xf32>
    %42 = tpu.matmul %33, %37, %cst_25 {dimension_numbers = #tpu.dot_dimension_numbers<[1], [1], [0], [0], [0, 0, 1, 0], [], []>} : vector<8x64xbf16>, vector<8x64xbf16>, vector<8x8xf32> -> vector<8x8xf32>
    %cst_26 = arith.constant -1.000000e+09 : f32
    "tpu.trace_stop"() : () -> ()
    %43 = vector.shape_cast %28 : vector<1x8xi1> to vector<1x8xi1>
    %44 = vector.broadcast %43 : vector<1x8xi1> to vector<8x8xi1>
    %45 = vector.broadcast %cst_26 : f32 to vector<8x8xf32>
    %46 = arith.select %44, %42, %45 : vector<8x8xi1>, vector<8x8xf32>
    %cst_27 = arith.constant dense<0xFF800000> : vector<8xf32>
    %47 = vector.multi_reduction <maximumf>, %46, %cst_27 [1] : vector<8x8xf32> to vector<8xf32>
    %48 = vector.shape_cast %47 : vector<8xf32> to vector<8x1xf32>
    %49 = vector.broadcast %48 : vector<8x1xf32> to vector<8x8xf32>
    %50 = arith.subf %46, %49 : vector<8x8xf32>
    %51 = math.exp %50 : vector<8x8xf32>
    %cst_28 = arith.constant dense<0.000000e+00> : vector<8xf32>
    %52 = vector.multi_reduction <add>, %51, %cst_28 [1] : vector<8x8xf32> to vector<8xf32>
    %53 = vector.shape_cast %52 : vector<8xf32> to vector<8x1xf32>
    %54 = tpu.reciprocal %53 {approx = true} : vector<8x1xf32> -> vector<8x1xf32>
    %55 = arith.truncf %51 : vector<8x8xf32> to vector<8x8xbf16>
    %cst_29 = arith.constant dense<0.000000e+00> : vector<8x64xf32>
    %56 = tpu.matmul %55, %41, %cst_29 {dimension_numbers = #tpu.dot_dimension_numbers<[1], [0], [0], [1], [0, 0, 1, 1], [], []>} : vector<8x8xbf16>, vector<8x64xbf16>, vector<8x64xf32> -> vector<8x64xf32>
    %57 = vector.broadcast %54 : vector<8x1xf32> to vector<8x64xf32>
    %58 = arith.mulf %56, %57 : vector<8x64xf32>
    %59 = arith.truncf %58 : vector<8x64xf32> to vector<8x64xbf16>
    %c0_30 = arith.constant 0 : index
    %c0_31 = arith.constant 0 : index
    %c0_32 = arith.constant 0 : index
    %60 = vector.load %arg8[%c0_30, %c0_31, %c0_32] : memref<8x64x32xbf16, #tpu.memory_space<vmem>>, vector<1x64x32xbf16>
    %61 = vector.shape_cast %60 : vector<1x64x32xbf16> to vector<64x32xbf16>
    %cst_33 = arith.constant dense<0.000000e+00> : vector<8x32xf32>
    %62 = tpu.matmul %59, %61, %cst_33 {dimension_numbers = #tpu.dot_dimension_numbers<[1], [0], [0], [1], [0, 0, 1, 1], [], []>} : vector<8x64xbf16>, vector<64x32xbf16>, vector<8x32xf32> -> vector<8x32xf32>
    %63 = arith.addf %29, %62 : vector<8x32xf32>
    %c1 = arith.constant 1 : index
    %c0_34 = arith.constant 0 : index
    %c0_35 = arith.constant 0 : index
    %64 = vector.load %arg7[%c1, %c0_34, %c0_35] : memref<24x32x64xbf16, #tpu.memory_space<vmem>>, vector<1x32x64xbf16>
    %65 = vector.shape_cast %64 : vector<1x32x64xbf16> to vector<32x64xbf16>
    %cst_36 = arith.constant dense<0.000000e+00> : vector<8x64xf32>
    %66 = tpu.matmul %24, %65, %cst_36 {dimension_numbers = #tpu.dot_dimension_numbers<[1], [0], [0], [1], [0, 0, 1, 1], [], []>} : vector<8x32xbf16>, vector<32x64xbf16>, vector<8x64xf32> -> vector<8x64xf32>
    %67 = arith.truncf %66 : vector<8x64xf32> to vector<8x64xbf16>
    %c9 = arith.constant 9 : index
    %c0_37 = arith.constant 0 : index
    %c0_38 = arith.constant 0 : index
    %68 = vector.load %arg7[%c9, %c0_37, %c0_38] : memref<24x32x64xbf16, #tpu.memory_space<vmem>>, vector<1x32x64xbf16>
    %69 = vector.shape_cast %68 : vector<1x32x64xbf16> to vector<32x64xbf16>
    %cst_39 = arith.constant dense<0.000000e+00> : vector<8x64xf32>
    %70 = tpu.matmul %24, %69, %cst_39 {dimension_numbers = #tpu.dot_dimension_numbers<[1], [0], [0], [1], [0, 0, 1, 1], [], []>} : vector<8x32xbf16>, vector<32x64xbf16>, vector<8x64xf32> -> vector<8x64xf32>
    %71 = arith.truncf %70 : vector<8x64xf32> to vector<8x64xbf16>
    %c17 = arith.constant 17 : index
    %c0_40 = arith.constant 0 : index
    %c0_41 = arith.constant 0 : index
    %72 = vector.load %arg7[%c17, %c0_40, %c0_41] : memref<24x32x64xbf16, #tpu.memory_space<vmem>>, vector<1x32x64xbf16>
    %73 = vector.shape_cast %72 : vector<1x32x64xbf16> to vector<32x64xbf16>
    %cst_42 = arith.constant dense<0.000000e+00> : vector<8x64xf32>
    %74 = tpu.matmul %24, %73, %cst_42 {dimension_numbers = #tpu.dot_dimension_numbers<[1], [0], [0], [1], [0, 0, 1, 1], [], []>} : vector<8x32xbf16>, vector<32x64xbf16>, vector<8x64xf32> -> vector<8x64xf32>
    %75 = arith.truncf %74 : vector<8x64xf32> to vector<8x64xbf16>
    "tpu.trace_start"() <{level = 10 : i32, message = "qd,kd->qk"}> : () -> ()
    %cst_43 = arith.constant dense<0.000000e+00> : vector<8x8xf32>
    %76 = tpu.matmul %67, %71, %cst_43 {dimension_numbers = #tpu.dot_dimension_numbers<[1], [1], [0], [0], [0, 0, 1, 0], [], []>} : vector<8x64xbf16>, vector<8x64xbf16>, vector<8x8xf32> -> vector<8x8xf32>
    %cst_44 = arith.constant -1.000000e+09 : f32
    "tpu.trace_stop"() : () -> ()
    %77 = vector.shape_cast %28 : vector<1x8xi1> to vector<1x8xi1>
    %78 = vector.broadcast %77 : vector<1x8xi1> to vector<8x8xi1>
    %79 = vector.broadcast %cst_44 : f32 to vector<8x8xf32>
    %80 = arith.select %78, %76, %79 : vector<8x8xi1>, vector<8x8xf32>
    %cst_45 = arith.constant dense<0xFF800000> : vector<8xf32>
    %81 = vector.multi_reduction <maximumf>, %80, %cst_45 [1] : vector<8x8xf32> to vector<8xf32>
    %82 = vector.shape_cast %81 : vector<8xf32> to vector<8x1xf32>
    %83 = vector.broadcast %82 : vector<8x1xf32> to vector<8x8xf32>
    %84 = arith.subf %80, %83 : vector<8x8xf32>
    %85 = math.exp %84 : vector<8x8xf32>
    %cst_46 = arith.constant dense<0.000000e+00> : vector<8xf32>
    %86 = vector.multi_reduction <add>, %85, %cst_46 [1] : vector<8x8xf32> to vector<8xf32>
    %87 = vector.shape_cast %86 : vector<8xf32> to vector<8x1xf32>
    %88 = tpu.reciprocal %87 {approx = true} : vector<8x1xf32> -> vector<8x1xf32>
    %89 = arith.truncf %85 : vector<8x8xf32> to vector<8x8xbf16>
    %cst_47 = arith.constant dense<0.000000e+00> : vector<8x64xf32>
    %90 = tpu.matmul %89, %75, %cst_47 {dimension_numbers = #tpu.dot_dimension_numbers<[1], [0], [0], [1], [0, 0, 1, 1], [], []>} : vector<8x8xbf16>, vector<8x64xbf16>, vector<8x64xf32> -> vector<8x64xf32>
    %91 = vector.broadcast %88 : vector<8x1xf32> to vector<8x64xf32>
    %92 = arith.mulf %90, %91 : vector<8x64xf32>
    %93 = arith.truncf %92 : vector<8x64xf32> to vector<8x64xbf16>
    %c1_48 = arith.constant 1 : index
    %c0_49 = arith.constant 0 : index
    %c0_50 = arith.constant 0 : index
    %94 = vector.load %arg8[%c1_48, %c0_49, %c0_50] : memref<8x64x32xbf16, #tpu.memory_space<vmem>>, vector<1x64x32xbf16>
    %95 = vector.shape_cast %94 : vector<1x64x32xbf16> to vector<64x32xbf16>
    %cst_51 = arith.constant dense<0.000000e+00> : vector<8x32xf32>
    %96 = tpu.matmul %93, %95, %cst_51 {dimension_numbers = #tpu.dot_dimension_numbers<[1], [0], [0], [1], [0, 0, 1, 1], [], []>} : vector<8x64xbf16>, vector<64x32xbf16>, vector<8x32xf32> -> vector<8x32xf32>
    %97 = arith.addf %63, %96 : vector<8x32xf32>
    %c2 = arith.constant 2 : index
    %c0_52 = arith.constant 0 : index
    %c0_53 = arith.constant 0 : index
    %98 = vector.load %arg7[%c2, %c0_52, %c0_53] : memref<24x32x64xbf16, #tpu.memory_space<vmem>>, vector<1x32x64xbf16>
    %99 = vector.shape_cast %98 : vector<1x32x64xbf16> to vector<32x64xbf16>
    %cst_54 = arith.constant dense<0.000000e+00> : vector<8x64xf32>
    %100 = tpu.matmul %24, %99, %cst_54 {dimension_numbers = #tpu.dot_dimension_numbers<[1], [0], [0], [1], [0, 0, 1, 1], [], []>} : vector<8x32xbf16>, vector<32x64xbf16>, vector<8x64xf32> -> vector<8x64xf32>
    %101 = arith.truncf %100 : vector<8x64xf32> to vector<8x64xbf16>
    %c10 = arith.constant 10 : index
    %c0_55 = arith.constant 0 : index
    %c0_56 = arith.constant 0 : index
    %102 = vector.load %arg7[%c10, %c0_55, %c0_56] : memref<24x32x64xbf16, #tpu.memory_space<vmem>>, vector<1x32x64xbf16>
    %103 = vector.shape_cast %102 : vector<1x32x64xbf16> to vector<32x64xbf16>
    %cst_57 = arith.constant dense<0.000000e+00> : vector<8x64xf32>
    %104 = tpu.matmul %24, %103, %cst_57 {dimension_numbers = #tpu.dot_dimension_numbers<[1], [0], [0], [1], [0, 0, 1, 1], [], []>} : vector<8x32xbf16>, vector<32x64xbf16>, vector<8x64xf32> -> vector<8x64xf32>
    %105 = arith.truncf %104 : vector<8x64xf32> to vector<8x64xbf16>
    %c18 = arith.constant 18 : index
    %c0_58 = arith.constant 0 : index
    %c0_59 = arith.constant 0 : index
    %106 = vector.load %arg7[%c18, %c0_58, %c0_59] : memref<24x32x64xbf16, #tpu.memory_space<vmem>>, vector<1x32x64xbf16>
    %107 = vector.shape_cast %106 : vector<1x32x64xbf16> to vector<32x64xbf16>
    %cst_60 = arith.constant dense<0.000000e+00> : vector<8x64xf32>
    %108 = tpu.matmul %24, %107, %cst_60 {dimension_numbers = #tpu.dot_dimension_numbers<[1], [0], [0], [1], [0, 0, 1, 1], [], []>} : vector<8x32xbf16>, vector<32x64xbf16>, vector<8x64xf32> -> vector<8x64xf32>
    %109 = arith.truncf %108 : vector<8x64xf32> to vector<8x64xbf16>
    "tpu.trace_start"() <{level = 10 : i32, message = "qd,kd->qk"}> : () -> ()
    %cst_61 = arith.constant dense<0.000000e+00> : vector<8x8xf32>
    %110 = tpu.matmul %101, %105, %cst_61 {dimension_numbers = #tpu.dot_dimension_numbers<[1], [1], [0], [0], [0, 0, 1, 0], [], []>} : vector<8x64xbf16>, vector<8x64xbf16>, vector<8x8xf32> -> vector<8x8xf32>
    %cst_62 = arith.constant -1.000000e+09 : f32
    "tpu.trace_stop"() : () -> ()
    %111 = vector.shape_cast %28 : vector<1x8xi1> to vector<1x8xi1>
    %112 = vector.broadcast %111 : vector<1x8xi1> to vector<8x8xi1>
    %113 = vector.broadcast %cst_62 : f32 to vector<8x8xf32>
    %114 = arith.select %112, %110, %113 : vector<8x8xi1>, vector<8x8xf32>
    %cst_63 = arith.constant dense<0xFF800000> : vector<8xf32>
    %115 = vector.multi_reduction <maximumf>, %114, %cst_63 [1] : vector<8x8xf32> to vector<8xf32>
    %116 = vector.shape_cast %115 : vector<8xf32> to vector<8x1xf32>
    %117 = vector.broadcast %116 : vector<8x1xf32> to vector<8x8xf32>
    %118 = arith.subf %114, %117 : vector<8x8xf32>
    %119 = math.exp %118 : vector<8x8xf32>
    %cst_64 = arith.constant dense<0.000000e+00> : vector<8xf32>
    %120 = vector.multi_reduction <add>, %119, %cst_64 [1] : vector<8x8xf32> to vector<8xf32>
    %121 = vector.shape_cast %120 : vector<8xf32> to vector<8x1xf32>
    %122 = tpu.reciprocal %121 {approx = true} : vector<8x1xf32> -> vector<8x1xf32>
    %123 = arith.truncf %119 : vector<8x8xf32> to vector<8x8xbf16>
    %cst_65 = arith.constant dense<0.000000e+00> : vector<8x64xf32>
    %124 = tpu.matmul %123, %109, %cst_65 {dimension_numbers = #tpu.dot_dimension_numbers<[1], [0], [0], [1], [0, 0, 1, 1], [], []>} : vector<8x8xbf16>, vector<8x64xbf16>, vector<8x64xf32> -> vector<8x64xf32>
    %125 = vector.broadcast %122 : vector<8x1xf32> to vector<8x64xf32>
    %126 = arith.mulf %124, %125 : vector<8x64xf32>
    %127 = arith.truncf %126 : vector<8x64xf32> to vector<8x64xbf16>
    %c2_66 = arith.constant 2 : index
    %c0_67 = arith.constant 0 : index
    %c0_68 = arith.constant 0 : index
    %128 = vector.load %arg8[%c2_66, %c0_67, %c0_68] : memref<8x64x32xbf16, #tpu.memory_space<vmem>>, vector<1x64x32xbf16>
    %129 = vector.shape_cast %128 : vector<1x64x32xbf16> to vector<64x32xbf16>
    %cst_69 = arith.constant dense<0.000000e+00> : vector<8x32xf32>
    %130 = tpu.matmul %127, %129, %cst_69 {dimension_numbers = #tpu.dot_dimension_numbers<[1], [0], [0], [1], [0, 0, 1, 1], [], []>} : vector<8x64xbf16>, vector<64x32xbf16>, vector<8x32xf32> -> vector<8x32xf32>
    %131 = arith.addf %97, %130 : vector<8x32xf32>
    %c3 = arith.constant 3 : index
    %c0_70 = arith.constant 0 : index
    %c0_71 = arith.constant 0 : index
    %132 = vector.load %arg7[%c3, %c0_70, %c0_71] : memref<24x32x64xbf16, #tpu.memory_space<vmem>>, vector<1x32x64xbf16>
    %133 = vector.shape_cast %132 : vector<1x32x64xbf16> to vector<32x64xbf16>
    %cst_72 = arith.constant dense<0.000000e+00> : vector<8x64xf32>
    %134 = tpu.matmul %24, %133, %cst_72 {dimension_numbers = #tpu.dot_dimension_numbers<[1], [0], [0], [1], [0, 0, 1, 1], [], []>} : vector<8x32xbf16>, vector<32x64xbf16>, vector<8x64xf32> -> vector<8x64xf32>
    %135 = arith.truncf %134 : vector<8x64xf32> to vector<8x64xbf16>
    %c11 = arith.constant 11 : index
    %c0_73 = arith.constant 0 : index
    %c0_74 = arith.constant 0 : index
    %136 = vector.load %arg7[%c11, %c0_73, %c0_74] : memref<24x32x64xbf16, #tpu.memory_space<vmem>>, vector<1x32x64xbf16>
    %137 = vector.shape_cast %136 : vector<1x32x64xbf16> to vector<32x64xbf16>
    %cst_75 = arith.constant dense<0.000000e+00> : vector<8x64xf32>
    %138 = tpu.matmul %24, %137, %cst_75 {dimension_numbers = #tpu.dot_dimension_numbers<[1], [0], [0], [1], [0, 0, 1, 1], [], []>} : vector<8x32xbf16>, vector<32x64xbf16>, vector<8x64xf32> -> vector<8x64xf32>
    %139 = arith.truncf %138 : vector<8x64xf32> to vector<8x64xbf16>
    %c19 = arith.constant 19 : index
    %c0_76 = arith.constant 0 : index
    %c0_77 = arith.constant 0 : index
    %140 = vector.load %arg7[%c19, %c0_76, %c0_77] : memref<24x32x64xbf16, #tpu.memory_space<vmem>>, vector<1x32x64xbf16>
    %141 = vector.shape_cast %140 : vector<1x32x64xbf16> to vector<32x64xbf16>
    %cst_78 = arith.constant dense<0.000000e+00> : vector<8x64xf32>
    %142 = tpu.matmul %24, %141, %cst_78 {dimension_numbers = #tpu.dot_dimension_numbers<[1], [0], [0], [1], [0, 0, 1, 1], [], []>} : vector<8x32xbf16>, vector<32x64xbf16>, vector<8x64xf32> -> vector<8x64xf32>
    %143 = arith.truncf %142 : vector<8x64xf32> to vector<8x64xbf16>
    "tpu.trace_start"() <{level = 10 : i32, message = "qd,kd->qk"}> : () -> ()
    %cst_79 = arith.constant dense<0.000000e+00> : vector<8x8xf32>
    %144 = tpu.matmul %135, %139, %cst_79 {dimension_numbers = #tpu.dot_dimension_numbers<[1], [1], [0], [0], [0, 0, 1, 0], [], []>} : vector<8x64xbf16>, vector<8x64xbf16>, vector<8x8xf32> -> vector<8x8xf32>
    %cst_80 = arith.constant -1.000000e+09 : f32
    "tpu.trace_stop"() : () -> ()
    %145 = vector.shape_cast %28 : vector<1x8xi1> to vector<1x8xi1>
    %146 = vector.broadcast %145 : vector<1x8xi1> to vector<8x8xi1>
    %147 = vector.broadcast %cst_80 : f32 to vector<8x8xf32>
    %148 = arith.select %146, %144, %147 : vector<8x8xi1>, vector<8x8xf32>
    %cst_81 = arith.constant dense<0xFF800000> : vector<8xf32>
    %149 = vector.multi_reduction <maximumf>, %148, %cst_81 [1] : vector<8x8xf32> to vector<8xf32>
    %150 = vector.shape_cast %149 : vector<8xf32> to vector<8x1xf32>
    %151 = vector.broadcast %150 : vector<8x1xf32> to vector<8x8xf32>
    %152 = arith.subf %148, %151 : vector<8x8xf32>
    %153 = math.exp %152 : vector<8x8xf32>
    %cst_82 = arith.constant dense<0.000000e+00> : vector<8xf32>
    %154 = vector.multi_reduction <add>, %153, %cst_82 [1] : vector<8x8xf32> to vector<8xf32>
    %155 = vector.shape_cast %154 : vector<8xf32> to vector<8x1xf32>
    %156 = tpu.reciprocal %155 {approx = true} : vector<8x1xf32> -> vector<8x1xf32>
    %157 = arith.truncf %153 : vector<8x8xf32> to vector<8x8xbf16>
    %cst_83 = arith.constant dense<0.000000e+00> : vector<8x64xf32>
    %158 = tpu.matmul %157, %143, %cst_83 {dimension_numbers = #tpu.dot_dimension_numbers<[1], [0], [0], [1], [0, 0, 1, 1], [], []>} : vector<8x8xbf16>, vector<8x64xbf16>, vector<8x64xf32> -> vector<8x64xf32>
    %159 = vector.broadcast %156 : vector<8x1xf32> to vector<8x64xf32>
    %160 = arith.mulf %158, %159 : vector<8x64xf32>
    %161 = arith.truncf %160 : vector<8x64xf32> to vector<8x64xbf16>
    %c3_84 = arith.constant 3 : index
    %c0_85 = arith.constant 0 : index
    %c0_86 = arith.constant 0 : index
    %162 = vector.load %arg8[%c3_84, %c0_85, %c0_86] : memref<8x64x32xbf16, #tpu.memory_space<vmem>>, vector<1x64x32xbf16>
    %163 = vector.shape_cast %162 : vector<1x64x32xbf16> to vector<64x32xbf16>
    %cst_87 = arith.constant dense<0.000000e+00> : vector<8x32xf32>
    %164 = tpu.matmul %161, %163, %cst_87 {dimension_numbers = #tpu.dot_dimension_numbers<[1], [0], [0], [1], [0, 0, 1, 1], [], []>} : vector<8x64xbf16>, vector<64x32xbf16>, vector<8x32xf32> -> vector<8x32xf32>
    %165 = arith.addf %131, %164 : vector<8x32xf32>
    %c4 = arith.constant 4 : index
    %c0_88 = arith.constant 0 : index
    %c0_89 = arith.constant 0 : index
    %166 = vector.load %arg7[%c4, %c0_88, %c0_89] : memref<24x32x64xbf16, #tpu.memory_space<vmem>>, vector<1x32x64xbf16>
    %167 = vector.shape_cast %166 : vector<1x32x64xbf16> to vector<32x64xbf16>
    %cst_90 = arith.constant dense<0.000000e+00> : vector<8x64xf32>
    %168 = tpu.matmul %24, %167, %cst_90 {dimension_numbers = #tpu.dot_dimension_numbers<[1], [0], [0], [1], [0, 0, 1, 1], [], []>} : vector<8x32xbf16>, vector<32x64xbf16>, vector<8x64xf32> -> vector<8x64xf32>
    %169 = arith.truncf %168 : vector<8x64xf32> to vector<8x64xbf16>
    %c12 = arith.constant 12 : index
    %c0_91 = arith.constant 0 : index
    %c0_92 = arith.constant 0 : index
    %170 = vector.load %arg7[%c12, %c0_91, %c0_92] : memref<24x32x64xbf16, #tpu.memory_space<vmem>>, vector<1x32x64xbf16>
    %171 = vector.shape_cast %170 : vector<1x32x64xbf16> to vector<32x64xbf16>
    %cst_93 = arith.constant dense<0.000000e+00> : vector<8x64xf32>
    %172 = tpu.matmul %24, %171, %cst_93 {dimension_numbers = #tpu.dot_dimension_numbers<[1], [0], [0], [1], [0, 0, 1, 1], [], []>} : vector<8x32xbf16>, vector<32x64xbf16>, vector<8x64xf32> -> vector<8x64xf32>
    %173 = arith.truncf %172 : vector<8x64xf32> to vector<8x64xbf16>
    %c20 = arith.constant 20 : index
    %c0_94 = arith.constant 0 : index
    %c0_95 = arith.constant 0 : index
    %174 = vector.load %arg7[%c20, %c0_94, %c0_95] : memref<24x32x64xbf16, #tpu.memory_space<vmem>>, vector<1x32x64xbf16>
    %175 = vector.shape_cast %174 : vector<1x32x64xbf16> to vector<32x64xbf16>
    %cst_96 = arith.constant dense<0.000000e+00> : vector<8x64xf32>
    %176 = tpu.matmul %24, %175, %cst_96 {dimension_numbers = #tpu.dot_dimension_numbers<[1], [0], [0], [1], [0, 0, 1, 1], [], []>} : vector<8x32xbf16>, vector<32x64xbf16>, vector<8x64xf32> -> vector<8x64xf32>
    %177 = arith.truncf %176 : vector<8x64xf32> to vector<8x64xbf16>
    "tpu.trace_start"() <{level = 10 : i32, message = "qd,kd->qk"}> : () -> ()
    %cst_97 = arith.constant dense<0.000000e+00> : vector<8x8xf32>
    %178 = tpu.matmul %169, %173, %cst_97 {dimension_numbers = #tpu.dot_dimension_numbers<[1], [1], [0], [0], [0, 0, 1, 0], [], []>} : vector<8x64xbf16>, vector<8x64xbf16>, vector<8x8xf32> -> vector<8x8xf32>
    %cst_98 = arith.constant -1.000000e+09 : f32
    "tpu.trace_stop"() : () -> ()
    %179 = vector.shape_cast %28 : vector<1x8xi1> to vector<1x8xi1>
    %180 = vector.broadcast %179 : vector<1x8xi1> to vector<8x8xi1>
    %181 = vector.broadcast %cst_98 : f32 to vector<8x8xf32>
    %182 = arith.select %180, %178, %181 : vector<8x8xi1>, vector<8x8xf32>
    %cst_99 = arith.constant dense<0xFF800000> : vector<8xf32>
    %183 = vector.multi_reduction <maximumf>, %182, %cst_99 [1] : vector<8x8xf32> to vector<8xf32>
    %184 = vector.shape_cast %183 : vector<8xf32> to vector<8x1xf32>
    %185 = vector.broadcast %184 : vector<8x1xf32> to vector<8x8xf32>
    %186 = arith.subf %182, %185 : vector<8x8xf32>
    %187 = math.exp %186 : vector<8x8xf32>
    %cst_100 = arith.constant dense<0.000000e+00> : vector<8xf32>
    %188 = vector.multi_reduction <add>, %187, %cst_100 [1] : vector<8x8xf32> to vector<8xf32>
    %189 = vector.shape_cast %188 : vector<8xf32> to vector<8x1xf32>
    %190 = tpu.reciprocal %189 {approx = true} : vector<8x1xf32> -> vector<8x1xf32>
    %191 = arith.truncf %187 : vector<8x8xf32> to vector<8x8xbf16>
    %cst_101 = arith.constant dense<0.000000e+00> : vector<8x64xf32>
    %192 = tpu.matmul %191, %177, %cst_101 {dimension_numbers = #tpu.dot_dimension_numbers<[1], [0], [0], [1], [0, 0, 1, 1], [], []>} : vector<8x8xbf16>, vector<8x64xbf16>, vector<8x64xf32> -> vector<8x64xf32>
    %193 = vector.broadcast %190 : vector<8x1xf32> to vector<8x64xf32>
    %194 = arith.mulf %192, %193 : vector<8x64xf32>
    %195 = arith.truncf %194 : vector<8x64xf32> to vector<8x64xbf16>
    %c4_102 = arith.constant 4 : index
    %c0_103 = arith.constant 0 : index
    %c0_104 = arith.constant 0 : index
    %196 = vector.load %arg8[%c4_102, %c0_103, %c0_104] : memref<8x64x32xbf16, #tpu.memory_space<vmem>>, vector<1x64x32xbf16>
    %197 = vector.shape_cast %196 : vector<1x64x32xbf16> to vector<64x32xbf16>
    %cst_105 = arith.constant dense<0.000000e+00> : vector<8x32xf32>
    %198 = tpu.matmul %195, %197, %cst_105 {dimension_numbers = #tpu.dot_dimension_numbers<[1], [0], [0], [1], [0, 0, 1, 1], [], []>} : vector<8x64xbf16>, vector<64x32xbf16>, vector<8x32xf32> -> vector<8x32xf32>
    %199 = arith.addf %165, %198 : vector<8x32xf32>
    %c5 = arith.constant 5 : index
    %c0_106 = arith.constant 0 : index
    %c0_107 = arith.constant 0 : index
    %200 = vector.load %arg7[%c5, %c0_106, %c0_107] : memref<24x32x64xbf16, #tpu.memory_space<vmem>>, vector<1x32x64xbf16>
    %201 = vector.shape_cast %200 : vector<1x32x64xbf16> to vector<32x64xbf16>
    %cst_108 = arith.constant dense<0.000000e+00> : vector<8x64xf32>
    %202 = tpu.matmul %24, %201, %cst_108 {dimension_numbers = #tpu.dot_dimension_numbers<[1], [0], [0], [1], [0, 0, 1, 1], [], []>} : vector<8x32xbf16>, vector<32x64xbf16>, vector<8x64xf32> -> vector<8x64xf32>
    %203 = arith.truncf %202 : vector<8x64xf32> to vector<8x64xbf16>
    %c13 = arith.constant 13 : index
    %c0_109 = arith.constant 0 : index
    %c0_110 = arith.constant 0 : index
    %204 = vector.load %arg7[%c13, %c0_109, %c0_110] : memref<24x32x64xbf16, #tpu.memory_space<vmem>>, vector<1x32x64xbf16>
    %205 = vector.shape_cast %204 : vector<1x32x64xbf16> to vector<32x64xbf16>
    %cst_111 = arith.constant dense<0.000000e+00> : vector<8x64xf32>
    %206 = tpu.matmul %24, %205, %cst_111 {dimension_numbers = #tpu.dot_dimension_numbers<[1], [0], [0], [1], [0, 0, 1, 1], [], []>} : vector<8x32xbf16>, vector<32x64xbf16>, vector<8x64xf32> -> vector<8x64xf32>
    %207 = arith.truncf %206 : vector<8x64xf32> to vector<8x64xbf16>
    %c21 = arith.constant 21 : index
    %c0_112 = arith.constant 0 : index
    %c0_113 = arith.constant 0 : index
    %208 = vector.load %arg7[%c21, %c0_112, %c0_113] : memref<24x32x64xbf16, #tpu.memory_space<vmem>>, vector<1x32x64xbf16>
    %209 = vector.shape_cast %208 : vector<1x32x64xbf16> to vector<32x64xbf16>
    %cst_114 = arith.constant dense<0.000000e+00> : vector<8x64xf32>
    %210 = tpu.matmul %24, %209, %cst_114 {dimension_numbers = #tpu.dot_dimension_numbers<[1], [0], [0], [1], [0, 0, 1, 1], [], []>} : vector<8x32xbf16>, vector<32x64xbf16>, vector<8x64xf32> -> vector<8x64xf32>
    %211 = arith.truncf %210 : vector<8x64xf32> to vector<8x64xbf16>
    "tpu.trace_start"() <{level = 10 : i32, message = "qd,kd->qk"}> : () -> ()
    %cst_115 = arith.constant dense<0.000000e+00> : vector<8x8xf32>
    %212 = tpu.matmul %203, %207, %cst_115 {dimension_numbers = #tpu.dot_dimension_numbers<[1], [1], [0], [0], [0, 0, 1, 0], [], []>} : vector<8x64xbf16>, vector<8x64xbf16>, vector<8x8xf32> -> vector<8x8xf32>
    %cst_116 = arith.constant -1.000000e+09 : f32
    "tpu.trace_stop"() : () -> ()
    %213 = vector.shape_cast %28 : vector<1x8xi1> to vector<1x8xi1>
    %214 = vector.broadcast %213 : vector<1x8xi1> to vector<8x8xi1>
    %215 = vector.broadcast %cst_116 : f32 to vector<8x8xf32>
    %216 = arith.select %214, %212, %215 : vector<8x8xi1>, vector<8x8xf32>
    %cst_117 = arith.constant dense<0xFF800000> : vector<8xf32>
    %217 = vector.multi_reduction <maximumf>, %216, %cst_117 [1] : vector<8x8xf32> to vector<8xf32>
    %218 = vector.shape_cast %217 : vector<8xf32> to vector<8x1xf32>
    %219 = vector.broadcast %218 : vector<8x1xf32> to vector<8x8xf32>
    %220 = arith.subf %216, %219 : vector<8x8xf32>
    %221 = math.exp %220 : vector<8x8xf32>
    %cst_118 = arith.constant dense<0.000000e+00> : vector<8xf32>
    %222 = vector.multi_reduction <add>, %221, %cst_118 [1] : vector<8x8xf32> to vector<8xf32>
    %223 = vector.shape_cast %222 : vector<8xf32> to vector<8x1xf32>
    %224 = tpu.reciprocal %223 {approx = true} : vector<8x1xf32> -> vector<8x1xf32>
    %225 = arith.truncf %221 : vector<8x8xf32> to vector<8x8xbf16>
    %cst_119 = arith.constant dense<0.000000e+00> : vector<8x64xf32>
    %226 = tpu.matmul %225, %211, %cst_119 {dimension_numbers = #tpu.dot_dimension_numbers<[1], [0], [0], [1], [0, 0, 1, 1], [], []>} : vector<8x8xbf16>, vector<8x64xbf16>, vector<8x64xf32> -> vector<8x64xf32>
    %227 = vector.broadcast %224 : vector<8x1xf32> to vector<8x64xf32>
    %228 = arith.mulf %226, %227 : vector<8x64xf32>
    %229 = arith.truncf %228 : vector<8x64xf32> to vector<8x64xbf16>
    %c5_120 = arith.constant 5 : index
    %c0_121 = arith.constant 0 : index
    %c0_122 = arith.constant 0 : index
    %230 = vector.load %arg8[%c5_120, %c0_121, %c0_122] : memref<8x64x32xbf16, #tpu.memory_space<vmem>>, vector<1x64x32xbf16>
    %231 = vector.shape_cast %230 : vector<1x64x32xbf16> to vector<64x32xbf16>
    %cst_123 = arith.constant dense<0.000000e+00> : vector<8x32xf32>
    %232 = tpu.matmul %229, %231, %cst_123 {dimension_numbers = #tpu.dot_dimension_numbers<[1], [0], [0], [1], [0, 0, 1, 1], [], []>} : vector<8x64xbf16>, vector<64x32xbf16>, vector<8x32xf32> -> vector<8x32xf32>
    %233 = arith.addf %199, %232 : vector<8x32xf32>
    %c6 = arith.constant 6 : index
    %c0_124 = arith.constant 0 : index
    %c0_125 = arith.constant 0 : index
    %234 = vector.load %arg7[%c6, %c0_124, %c0_125] : memref<24x32x64xbf16, #tpu.memory_space<vmem>>, vector<1x32x64xbf16>
    %235 = vector.shape_cast %234 : vector<1x32x64xbf16> to vector<32x64xbf16>
    %cst_126 = arith.constant dense<0.000000e+00> : vector<8x64xf32>
    %236 = tpu.matmul %24, %235, %cst_126 {dimension_numbers = #tpu.dot_dimension_numbers<[1], [0], [0], [1], [0, 0, 1, 1], [], []>} : vector<8x32xbf16>, vector<32x64xbf16>, vector<8x64xf32> -> vector<8x64xf32>
    %237 = arith.truncf %236 : vector<8x64xf32> to vector<8x64xbf16>
    %c14 = arith.constant 14 : index
    %c0_127 = arith.constant 0 : index
    %c0_128 = arith.constant 0 : index
    %238 = vector.load %arg7[%c14, %c0_127, %c0_128] : memref<24x32x64xbf16, #tpu.memory_space<vmem>>, vector<1x32x64xbf16>
    %239 = vector.shape_cast %238 : vector<1x32x64xbf16> to vector<32x64xbf16>
    %cst_129 = arith.constant dense<0.000000e+00> : vector<8x64xf32>
    %240 = tpu.matmul %24, %239, %cst_129 {dimension_numbers = #tpu.dot_dimension_numbers<[1], [0], [0], [1], [0, 0, 1, 1], [], []>} : vector<8x32xbf16>, vector<32x64xbf16>, vector<8x64xf32> -> vector<8x64xf32>
    %241 = arith.truncf %240 : vector<8x64xf32> to vector<8x64xbf16>
    %c22 = arith.constant 22 : index
    %c0_130 = arith.constant 0 : index
    %c0_131 = arith.constant 0 : index
    %242 = vector.load %arg7[%c22, %c0_130, %c0_131] : memref<24x32x64xbf16, #tpu.memory_space<vmem>>, vector<1x32x64xbf16>
    %243 = vector.shape_cast %242 : vector<1x32x64xbf16> to vector<32x64xbf16>
    %cst_132 = arith.constant dense<0.000000e+00> : vector<8x64xf32>
    %244 = tpu.matmul %24, %243, %cst_132 {dimension_numbers = #tpu.dot_dimension_numbers<[1], [0], [0], [1], [0, 0, 1, 1], [], []>} : vector<8x32xbf16>, vector<32x64xbf16>, vector<8x64xf32> -> vector<8x64xf32>
    %245 = arith.truncf %244 : vector<8x64xf32> to vector<8x64xbf16>
    "tpu.trace_start"() <{level = 10 : i32, message = "qd,kd->qk"}> : () -> ()
    %cst_133 = arith.constant dense<0.000000e+00> : vector<8x8xf32>
    %246 = tpu.matmul %237, %241, %cst_133 {dimension_numbers = #tpu.dot_dimension_numbers<[1], [1], [0], [0], [0, 0, 1, 0], [], []>} : vector<8x64xbf16>, vector<8x64xbf16>, vector<8x8xf32> -> vector<8x8xf32>
    %cst_134 = arith.constant -1.000000e+09 : f32
    "tpu.trace_stop"() : () -> ()
    %247 = vector.shape_cast %28 : vector<1x8xi1> to vector<1x8xi1>
    %248 = vector.broadcast %247 : vector<1x8xi1> to vector<8x8xi1>
    %249 = vector.broadcast %cst_134 : f32 to vector<8x8xf32>
    %250 = arith.select %248, %246, %249 : vector<8x8xi1>, vector<8x8xf32>
    %cst_135 = arith.constant dense<0xFF800000> : vector<8xf32>
    %251 = vector.multi_reduction <maximumf>, %250, %cst_135 [1] : vector<8x8xf32> to vector<8xf32>
    %252 = vector.shape_cast %251 : vector<8xf32> to vector<8x1xf32>
    %253 = vector.broadcast %252 : vector<8x1xf32> to vector<8x8xf32>
    %254 = arith.subf %250, %253 : vector<8x8xf32>
    %255 = math.exp %254 : vector<8x8xf32>
    %cst_136 = arith.constant dense<0.000000e+00> : vector<8xf32>
    %256 = vector.multi_reduction <add>, %255, %cst_136 [1] : vector<8x8xf32> to vector<8xf32>
    %257 = vector.shape_cast %256 : vector<8xf32> to vector<8x1xf32>
    %258 = tpu.reciprocal %257 {approx = true} : vector<8x1xf32> -> vector<8x1xf32>
    %259 = arith.truncf %255 : vector<8x8xf32> to vector<8x8xbf16>
    %cst_137 = arith.constant dense<0.000000e+00> : vector<8x64xf32>
    %260 = tpu.matmul %259, %245, %cst_137 {dimension_numbers = #tpu.dot_dimension_numbers<[1], [0], [0], [1], [0, 0, 1, 1], [], []>} : vector<8x8xbf16>, vector<8x64xbf16>, vector<8x64xf32> -> vector<8x64xf32>
    %261 = vector.broadcast %258 : vector<8x1xf32> to vector<8x64xf32>
    %262 = arith.mulf %260, %261 : vector<8x64xf32>
    %263 = arith.truncf %262 : vector<8x64xf32> to vector<8x64xbf16>
    %c6_138 = arith.constant 6 : index
    %c0_139 = arith.constant 0 : index
    %c0_140 = arith.constant 0 : index
    %264 = vector.load %arg8[%c6_138, %c0_139, %c0_140] : memref<8x64x32xbf16, #tpu.memory_space<vmem>>, vector<1x64x32xbf16>
    %265 = vector.shape_cast %264 : vector<1x64x32xbf16> to vector<64x32xbf16>
    %cst_141 = arith.constant dense<0.000000e+00> : vector<8x32xf32>
    %266 = tpu.matmul %263, %265, %cst_141 {dimension_numbers = #tpu.dot_dimension_numbers<[1], [0], [0], [1], [0, 0, 1, 1], [], []>} : vector<8x64xbf16>, vector<64x32xbf16>, vector<8x32xf32> -> vector<8x32xf32>
    %267 = arith.addf %233, %266 : vector<8x32xf32>
    %c7 = arith.constant 7 : index
    %c0_142 = arith.constant 0 : index
    %c0_143 = arith.constant 0 : index
    %268 = vector.load %arg7[%c7, %c0_142, %c0_143] : memref<24x32x64xbf16, #tpu.memory_space<vmem>>, vector<1x32x64xbf16>
    %269 = vector.shape_cast %268 : vector<1x32x64xbf16> to vector<32x64xbf16>
    %cst_144 = arith.constant dense<0.000000e+00> : vector<8x64xf32>
    %270 = tpu.matmul %24, %269, %cst_144 {dimension_numbers = #tpu.dot_dimension_numbers<[1], [0], [0], [1], [0, 0, 1, 1], [], []>} : vector<8x32xbf16>, vector<32x64xbf16>, vector<8x64xf32> -> vector<8x64xf32>
    %271 = arith.truncf %270 : vector<8x64xf32> to vector<8x64xbf16>
    %c15 = arith.constant 15 : index
    %c0_145 = arith.constant 0 : index
    %c0_146 = arith.constant 0 : index
    %272 = vector.load %arg7[%c15, %c0_145, %c0_146] : memref<24x32x64xbf16, #tpu.memory_space<vmem>>, vector<1x32x64xbf16>
    %273 = vector.shape_cast %272 : vector<1x32x64xbf16> to vector<32x64xbf16>
    %cst_147 = arith.constant dense<0.000000e+00> : vector<8x64xf32>
    %274 = tpu.matmul %24, %273, %cst_147 {dimension_numbers = #tpu.dot_dimension_numbers<[1], [0], [0], [1], [0, 0, 1, 1], [], []>} : vector<8x32xbf16>, vector<32x64xbf16>, vector<8x64xf32> -> vector<8x64xf32>
    %275 = arith.truncf %274 : vector<8x64xf32> to vector<8x64xbf16>
    %c23 = arith.constant 23 : index
    %c0_148 = arith.constant 0 : index
    %c0_149 = arith.constant 0 : index
    %276 = vector.load %arg7[%c23, %c0_148, %c0_149] : memref<24x32x64xbf16, #tpu.memory_space<vmem>>, vector<1x32x64xbf16>
    %277 = vector.shape_cast %276 : vector<1x32x64xbf16> to vector<32x64xbf16>
    %cst_150 = arith.constant dense<0.000000e+00> : vector<8x64xf32>
    %278 = tpu.matmul %24, %277, %cst_150 {dimension_numbers = #tpu.dot_dimension_numbers<[1], [0], [0], [1], [0, 0, 1, 1], [], []>} : vector<8x32xbf16>, vector<32x64xbf16>, vector<8x64xf32> -> vector<8x64xf32>
    %279 = arith.truncf %278 : vector<8x64xf32> to vector<8x64xbf16>
    "tpu.trace_start"() <{level = 10 : i32, message = "qd,kd->qk"}> : () -> ()
    %cst_151 = arith.constant dense<0.000000e+00> : vector<8x8xf32>
    %280 = tpu.matmul %271, %275, %cst_151 {dimension_numbers = #tpu.dot_dimension_numbers<[1], [1], [0], [0], [0, 0, 1, 0], [], []>} : vector<8x64xbf16>, vector<8x64xbf16>, vector<8x8xf32> -> vector<8x8xf32>
    %cst_152 = arith.constant -1.000000e+09 : f32
    "tpu.trace_stop"() : () -> ()
    %281 = vector.shape_cast %28 : vector<1x8xi1> to vector<1x8xi1>
    %282 = vector.broadcast %281 : vector<1x8xi1> to vector<8x8xi1>
    %283 = vector.broadcast %cst_152 : f32 to vector<8x8xf32>
    %284 = arith.select %282, %280, %283 : vector<8x8xi1>, vector<8x8xf32>
    %cst_153 = arith.constant dense<0xFF800000> : vector<8xf32>
    %285 = vector.multi_reduction <maximumf>, %284, %cst_153 [1] : vector<8x8xf32> to vector<8xf32>
    %286 = vector.shape_cast %285 : vector<8xf32> to vector<8x1xf32>
    %287 = vector.broadcast %286 : vector<8x1xf32> to vector<8x8xf32>
    %288 = arith.subf %284, %287 : vector<8x8xf32>
    %289 = math.exp %288 : vector<8x8xf32>
    %cst_154 = arith.constant dense<0.000000e+00> : vector<8xf32>
    %290 = vector.multi_reduction <add>, %289, %cst_154 [1] : vector<8x8xf32> to vector<8xf32>
    %291 = vector.shape_cast %290 : vector<8xf32> to vector<8x1xf32>
    %292 = tpu.reciprocal %291 {approx = true} : vector<8x1xf32> -> vector<8x1xf32>
    %293 = arith.truncf %289 : vector<8x8xf32> to vector<8x8xbf16>
    %cst_155 = arith.constant dense<0.000000e+00> : vector<8x64xf32>
    %294 = tpu.matmul %293, %279, %cst_155 {dimension_numbers = #tpu.dot_dimension_numbers<[1], [0], [0], [1], [0, 0, 1, 1], [], []>} : vector<8x8xbf16>, vector<8x64xbf16>, vector<8x64xf32> -> vector<8x64xf32>
    %295 = vector.broadcast %292 : vector<8x1xf32> to vector<8x64xf32>
    %296 = arith.mulf %294, %295 : vector<8x64xf32>
    %297 = arith.truncf %296 : vector<8x64xf32> to vector<8x64xbf16>
    %c7_156 = arith.constant 7 : index
    %c0_157 = arith.constant 0 : index
    %c0_158 = arith.constant 0 : index
    %298 = vector.load %arg8[%c7_156, %c0_157, %c0_158] : memref<8x64x32xbf16, #tpu.memory_space<vmem>>, vector<1x64x32xbf16>
    %299 = vector.shape_cast %298 : vector<1x64x32xbf16> to vector<64x32xbf16>
    %cst_159 = arith.constant dense<0.000000e+00> : vector<8x32xf32>
    %300 = tpu.matmul %297, %299, %cst_159 {dimension_numbers = #tpu.dot_dimension_numbers<[1], [0], [0], [1], [0, 0, 1, 1], [], []>} : vector<8x64xbf16>, vector<64x32xbf16>, vector<8x32xf32> -> vector<8x32xf32>
    %301 = arith.addf %267, %300 : vector<8x32xf32>
    %c0_160 = arith.constant 0 : index
    %c0_161 = arith.constant 0 : index
    %c0_162 = arith.constant 0 : index
    %302 = vector.load %arg4[%c0_160, %c0_161, %c0_162] : memref<1x8x1xf32, #tpu.memory_space<vmem>>, vector<1x8x1xf32>
    %303 = vector.shape_cast %302 : vector<1x8x1xf32> to vector<8x1xf32>
    %cst_163 = arith.constant 0.000000e+00 : f32
    %304 = vector.broadcast %cst_163 : f32 to vector<8x1xf32>
    %305 = arith.cmpf ogt, %303, %304 : vector<8x1xf32>
    %cst_164 = arith.constant 0.000000e+00 : f32
    %306 = vector.shape_cast %305 : vector<8x1xi1> to vector<8x1xi1>
    %307 = vector.broadcast %306 : vector<8x1xi1> to vector<8x32xi1>
    %308 = vector.broadcast %cst_164 : f32 to vector<8x32xf32>
    %309 = arith.select %307, %301, %308 : vector<8x32xi1>, vector<8x32xf32>
    %c0_165 = arith.constant 0 : index
    %c0_166 = arith.constant 0 : index
    %c0_167 = arith.constant 0 : index
    %310 = vector.load %arg9[%c0_165, %c0_166, %c0_167] : memref<1x8x32xf32, #tpu.memory_space<vmem>>, vector<1x8x32xf32>
    %311 = vector.shape_cast %310 : vector<1x8x32xf32> to vector<8x32xf32>
    %312 = vector.shape_cast %309 : vector<8x32xf32> to vector<1x8x32xf32>
    tpu.vector_store %arg9[%c0_165, %c0_166, %c0_167], %312 {strides = array<i32>} : memref<1x8x32xf32, #tpu.memory_space<vmem>>, vector<1x8x32xf32>,
    return
  }
  func.func @transform_0(%arg0: i32, %arg1: i32) -> (i32, i32, i32) {
    %c0_i32 = arith.constant 0 : i32
    %c0_i32_0 = arith.constant 0 : i32
    %c0_i32_1 = arith.constant 0 : i32
    return %arg0, %c0_i32, %c0_i32_0 : i32, i32, i32
  }
  func.func @transform_1(%arg0: i32, %arg1: i32) -> (i32, i32, i32) {
    %c0_i32 = arith.constant 0 : i32
    %c0_i32_0 = arith.constant 0 : i32
    %c0_i32_1 = arith.constant 0 : i32
    return %arg0, %c0_i32, %c0_i32_0 : i32, i32, i32
  }
  func.func @transform_2(%arg0: i32, %arg1: i32) -> (i32, i32, i32) {
    %c0_i32 = arith.constant 0 : i32
    %c0_i32_0 = arith.constant 0 : i32
    return %arg0, %arg1, %c0_i32 : i32, i32, i32
  }
  func.func @transform_3(%arg0: i32, %arg1: i32) -> (i32, i32) {
    %c0_i32 = arith.constant 0 : i32
    %c0_i32_0 = arith.constant 0 : i32
    %c0_i32_1 = arith.constant 0 : i32
    return %c0_i32, %c0_i32_0 : i32, i32
  }
  func.func @transform_4(%arg0: i32, %arg1: i32) -> (i32, i32) {
    %c0_i32 = arith.constant 0 : i32
    %c0_i32_0 = arith.constant 0 : i32
    %c0_i32_1 = arith.constant 0 : i32
    return %c0_i32, %c0_i32_0 : i32, i32
  }
  func.func @transform_5(%arg0: i32, %arg1: i32) -> (i32, i32, i32) {
    %c0_i32 = arith.constant 0 : i32
    %c0_i32_0 = arith.constant 0 : i32
    %c0_i32_1 = arith.constant 0 : i32
    %c0_i32_2 = arith.constant 0 : i32
    return %c0_i32, %c0_i32_0, %c0_i32_1 : i32, i32, i32
  }
  func.func @transform_6(%arg0: i32, %arg1: i32) -> (i32, i32, i32) {
    %c0_i32 = arith.constant 0 : i32
    %c0_i32_0 = arith.constant 0 : i32
    %c0_i32_1 = arith.constant 0 : i32
    %c0_i32_2 = arith.constant 0 : i32
    return %c0_i32, %c0_i32_0, %c0_i32_1 : i32, i32, i32
  }
  func.func @transform_7(%arg0: i32, %arg1: i32) -> (i32, i32, i32) {
    %c0_i32 = arith.constant 0 : i32
    %c0_i32_0 = arith.constant 0 : i32
    return %arg0, %arg1, %c0_i32 : i32, i32, i32
  }
}

</mosaic_0001>

<bundles_post_ra>
// kernel: tpu_custom_call.1
= control target key start
LH: loop header
LB: loop body
LE: loop exit
PB: predicated region body
PF: predicated region fallthrough
CT: control target
= control target key end

     0   :  { %12 = vsyncpa [#allocation3], 0  ;;  %s5187_s0 = inlined_call_operand.vmem [shape: f32[2,8,32], index: 0, kind: input, shape index: {}]   ;;  %s5188_s1 = inlined_call_operand.vmem [shape: f32[2,1,8], index: 1, kind: input, shape index: {}]   ;;  %s5189_s2 = inlined_call_operand.vmem [shape: f32[2,8,1], index: 2, kind: input, shape index: {}]   ;;  %s5190_s3 = inlined_call_operand.vmem [shape: f32[1,32], index: 3, kind: input, shape index: {}]   ;;  %s5191_s4 = inlined_call_operand.vmem [shape: f32[1,32], index: 4, kind: input, shape index: {}]   ;;  %s5192_s5 = inlined_call_operand.vmem [shape: bf16[24,32,64], index: 5, kind: input, shape index: {}]   ;;  %s5193_s6 = inlined_call_operand.vmem [shape: bf16[8,64,32], index: 6, kind: input, shape index: {}]   ;;  %s5194_s7 = inlined_call_operand.hbm [shape: f32[2,8,32], index: 7, kind: output, shape index: {}]  }
   0x1   :  { %14 = vsyncpa [#allocation3 + $0x1], 0  ;;  %s4489_s24 = smov 0   ;;  %s4491_s25 = smov 0  }
   0x2   :  { %s4493_s26 = smov 0   ;;  %s4495_s27 = smov 0  }
   0x3   :  { %s4497_s28 = smov 0   ;;  %s4499_s29 = smov 0  }
   0x4 LB: > { %s3346_s30 = sadd.s32 4294967295, %s4443_s29   ;;  %s3347_s8 = sadd.s32 4294967294, %s4443_s29   ;;  %s4443_s29 = sphi %s4499_s29, %s20_s29   ;;  %s4439_s28 = sphi %s4497_s28, %s5201_s28   ;;  %s4435_s27 = sphi %s4495_s27, %s5200_s27   ;;  %s4431_s26 = sphi %s4493_s26, %s5199_s26   ;;  %s4427_s25 = sphi %s4491_s25, %s5198_s25   ;;  %s4423_s24 = sphi %s4489_s24, %s5197_s24  }
   0x5   : > { %s32_s9 = sadd.s32 1, %s4439_s28  ;;  %s205_s10 = sadd.s32 1, %s4431_s26 }
   0x6   : > { %p34_p0 = scmp.ge.s32.totalorder %s32_s9, 2  ;;  %p215_p1 = scmp.ne.s32.totalorder %s4431_s26, %s4427_s25 }
   0x7   : > { %p216_p2 = scmp.eq.s32.totalorder %s3346_s30, 1  ;;  %p221_p3 = scmp.ne.s32.totalorder %s4427_s25, %s4423_s24 }
   0x8   : > { %s5203_s9 = smov (%p34_p0, %s32_s9), 0  ;;  %p222_p5 = scmp.eq.s32.totalorder %s3347_s8, 1 }
   0x9   : > { %p4529_p4 = por %p216_p2, %p215_p1  ;;  %s200_s12 = ssub.s32 %s4439_s28, %s5203_s9 }
   0xa   : > { %p3350_p6 = scmp.ge.s32.totalorder %s4443_s29, 1  ;;  %p203_p7 = scmp.eq.s32.totalorder %s200_s12, 0 }
   0xb   : > { %p4536_p8 = por %p222_p5, %p221_p3  ;;  %p275_p9 = scmp.lt.s32.totalorder %s4443_s29, 3 }
   0xc   : > { %s4542_s14 = scalar_select %p203_p7, %s4431_s26, %s205_s10  }
   0xd   : > { %p276_p10 = pnand %p3350_p6, %p275_p9 }
   0xe   : > { %p316_p11 = scmp.lt.s32.totalorder (!%p276_p10), %s4435_s27, 1  ;;  %v4445_v0 = vmov (!%p276_p10), 0   ;;  %vm334_vm0 = vcmask (!%p276_p10), 261120   ;;  %v4251_v8 = vld [vmem:[%s5192_s5] sm:$0xff] (!%p276_p10)   ;;  %v4446_v10 = vmov (!%p276_p10), 0.0   ;;  %v4253_v11 = vld [vmem:[%s5192_s5 + $0x8] sm:$0xff] (!%p276_p10)   ;;  %v590_v46 = vlaneseq (!%p276_p10) }
   0xf   : > { %279 = sbr.rel (%p276_p10) target bundleno = 5616 (0x15f0), region = 48  ;;  %4250 = vset.pattern.permute.xlu0 (!%p276_p10), %v4445_v0  ;;  %v4252_v9 = vld [vmem:[%s5192_s5 + $0x100] sm:$0xff] (!%p276_p10)   ;;  %3780 = vmatprep.subr.bf16.mxu1 (!%p276_p10), %v4446_v10  ;;  %v4254_v12 = vld [vmem:[%s5192_s5 + $0x108] sm:$0xff] (!%p276_p10)   ;;  %vm4447_vm1 = vmmov (!%p276_p10), 0   ;;  %vm611_vm2 = vcmask (!%p276_p10), 1043456   ;;  %vm542_vm3 = vcmask (!%p276_p10), 523264  }
  0x10   : > { %3796 = vmatprep.subr.bf16.mxu0 (!%p276_p10), %v4446_v10  ;;  %3781 = vmatpush3.bf16.msra.mxu1 (!%p276_p10), %v4251_v8  ;;  %v3354_v17 = vld [vmem:[%s5190_s3] ss:$0 sm:$0xff] (!%p276_p10)  ;;  %v4256_v24 = vld [vmem:[%s5192_s5 + $0x88] sm:$0xff] (!%p276_p10)   ;;  %v4257_v41 = vld [vmem:[%s5192_s5 + $0x10] sm:$0xff] (!%p276_p10)   ;;  %v591_v48 = vshrl.u32 (!%p276_p10), %v590_v46, 7  ;;  %vm596_vm6 = vcmask (!%p276_p10), 64512  }
  0x11   : > { %3797 = vmatpush3.bf16.msra.mxu0 (!%p276_p10), %v4252_v9  ;;  %3782 = vmatprep.subr.bf16.mxu1 (!%p276_p10), %v4446_v10  ;;  %v3355_v19 = vld [vmem:[%s5191_s4] ss:$0 sm:$0xff] (!%p276_p10)  ;;  %v4258_v43 = vld [vmem:[%s5192_s5 + $0x18] sm:$0xff] (!%p276_p10)   ;;  %v4259_v44 = vld [vmem:[%s5192_s5 + $0x110] sm:$0xff] (!%p276_p10)   ;;  %s3633_s8 = sshll.u32 (!%p276_p10), %s4435_s27, 7  ;;  %s4448_s21 = smov (!%p276_p10), [#allocation2]  }
  0x12   : > { %3798 = vmatprep.subr.bf16.mxu0 (!%p276_p10), %v4446_v10  ;;  %3784 = vmatprep.mubr.msk.bf16.mxu1 (!%p276_p10), %vm4447_vm1, %v4446_v10  ;;  %v4255_v22 = vld [vmem:[%s5192_s5 + $0x80] sm:$0xff] (!%p276_p10)   ;;  %v4260_v45 = vld [vmem:[%s5192_s5 + $0x118] sm:$0xff] (!%p276_p10)   ;;  %v592_v49 = vsub.s32 (!%p276_p10), 0, %v591_v48  ;;  %v4261_v9 = vld [vmem:[%s5192_s5 + $0x90] sm:$0xff] (!%p276_p10)   ;;  %s4369_s22 = sshll.u32 (!%p276_p10), %s4448_s21, 4  ;;  %s4370_s22 = int_to_ptr.vmem [resolvable:$false] %s4369_s22 }
  0x13   : > { %3800 = vmatprep.mubr.msk.bf16.mxu0 (!%p276_p10), %vm4447_vm1, %v4446_v10  ;;  %v4271_v46 = vld [vmem:[%s5193_s6 + $0x30] sm:$0xff] (!%p276_p10)   ;;  %s4371_s23 = scalar_lea.vmem (!%p276_p10), %s4370_s22, 256 }
  0x14   : > { %3783 = vmatpush3.bf16.msra.mxu1 (!%p276_p10), %v4253_v11 }
  0x15   : > { %3799 = vmatpush3.bf16.msra.mxu0 (!%p276_p10), %v4254_v12  ;;  %3788 = vmatprep.subr.bf16.mxu1 (!%p276_p10), %v4446_v10  ;;  %v4262_v12 = vld [vmem:[%s5192_s5 + $0x98] sm:$0xff] (!%p276_p10)  }
  0x16   : > { %s4547_s15 = scalar_select %p316_p11, %s4435_s27, 1  ;;  %3810 = vmatprep.subr.bf16.mxu0 %v4446_v10 }
  0x18   : > { %s3352_s16 = sshll.u32 %s4547_s15, 3  ;;  %s322_s30 = scalar_lea.vmem %s5188_s1, %s4547_s15 }
  0x19   : > { %s319_s19 = scalar_lea.vmem %s5187_s0, %s3352_s16  ;;  %v364_v47 = vld [vmem:[%s322_s30] sm:$0x1]  ;;  %s329_s30 = scalar_lea.vmem %s5189_s2, %s3352_s16 }
  0x1a   : > { %v331_v1 = vld [vmem:[%s319_s19] sm:$0xff]  ;;  %vm365_vm4 = vcmp.gt.f32.partialorder %v364_v47, 0.0  ;;  %v4272_v47 = vld [vmem:[%s5193_s6 + $0x38] sm:$0xff]   ;;  %s313_s15 = sand.u32 1, %s4427_s25   ;;  %s5139_s19 = scalar_lea.hbm %s5194_s7, %s3633_s8 }
  0x1b   : > { %v335_v2 = vsel %vm334_vm0, %v331_v1, 0.0  ;;  %v589_v50 = vsel %vm365_vm4, 1, %v4445_v0  ;;  %s3351_s16 = sshll.u32 %s313_s15, 3  ;;  %s3240_s27 = scalar_lea.sflag [#allocation3], %s313_s15 }
  0x1c   : > { %336 = vadd.xlane.f32.xlu0 %v335_v2  ;;  %v4643_v51 = vrot.slane %v589_v50, %v592_v49  ;;  %s315_s10 = scalar_lea.vmem [#allocation2], %s3351_s16 }
  0x1d   : > { %s3254_s12 = sshll.u32 %s315_s10, 4  ;;  %s5141_s12 = int_to_ptr.vmem [resolvable:$true] %s3254_s12 }
  0x1e   : > { %vm594_vm5 = vcmp.eq.s32.totalorder %v4643_v51, 1  ;;  %v4327_v51 = vld [vmem:[%s5193_s6 + $0xe0] sm:$0xff]   ;;  %s4365_s20 = scalar_lea.vmem %s5141_s12, 128  ;;  %p4372_p1 = scmp.lt.s32.totalorder %s5141_s12, %s4370_s22 }
  0x1f   : > { %p4366_p12 = scmp.ne.s32.totalorder %s5141_s12, %s4365_s20  ;;  %p4373_p2 = scmp.lt.s32.totalorder %s4371_s23, %s4365_s20 }
  0x21   : > { %p4367_p13 = pnand %p4366_p12, %p4529_p4  ;;  %p4374_p3 = por %p4373_p2, %p4372_p1 }
  0x23   : > { %p4368_p0 = pneg %p4367_p13 }
  0x25   : > { %p4375_p5 = pnand %p4374_p3, %p4368_p0 }
  0xa9   : > { %v337_v3 = vpop.xlane.xlu0 %336 }
  0xaa   : > { %v339_v4 = vmul.f32 0.03125, %v337_v3 }
  0xac   : > { %v340_v5 = vsub.f32 %v331_v1, %v339_v4 }
  0xae   : > { %v341_v6 = vmul.f32 %v340_v5, %v340_v5 }
  0xb0   : > { %v342_v7 = vsel %vm334_vm0, %v341_v6, 0.0 }
  0xb1   : > { %343 = vadd.xlane.f32.xlu0 %v342_v7 }
 0x13e   : > { %v344_v13 = vpop.xlane.xlu0 %343 }
 0x13f   : > { %v345_v14 = vmul.f32 0.03125, %v344_v13 }
 0x141   : > { %v346_v15 = vadd.f32 1e-05, %v345_v14 }
 0x143   : > { %4331 = vrsqrt.f32 %v346_v15 }
 0x14d   : > { %v4332_v16 = vpop.eup %4331 }
 0x14e   : > { %v348_v18 = vmul.f32 %v4332_v16, %v340_v5 }
 0x150   : > { %v355_v20 = vmul.f32 %v3354_v17, %v348_v18 }
 0x152   : > { %v362_v21 = vadd.f32 %v3355_v19, %v355_v20 }
 0x154   : > { %v4588_v23 = vpack.c.bf16 %v362_v21, %v362_v21 }
 0x156   : > { %3785 = vmatmul.mubr.msk.bf16.vlgmr.msra.gmra.mrb[0].mxu1 %vm334_vm0, %v4588_v23  ;;  %3801 = vmatmul.mubr.msk.bf16.vlgmr.msra.gmra.mrb[0].mxu0 %vm334_vm0, %v4588_v23 }
 0x157   : > { %3789 = vmatpush3.bf16.msra.mxu1 %v4255_v22  ;;  %3792 = vmatprep.mubr.msk.bf16.mxu1 %vm4447_vm1, %v4446_v10 }
 0x158   : > { %3790 = vmatprep.subr.bf16.mxu1 %v4446_v10  ;;  %3812 = vmatprep.mubr.msk.bf16.mxu0 %vm4447_vm1, %v4446_v10 }
 0x15b   : > { %3791 = vmatpush3.bf16.msra.mxu1 %v4256_v24 }
 0x15c   : > { %3804 = vmatprep.subr.bf16.mxu1 %v4446_v10 }
 0x15e   : > { %3793 = vmatmul.mubr.msk.bf16.vlgmr.msra.gmra.mrb[4].mxu1 %vm334_vm0, %v4588_v23 }
 0x15f   : > { %3806 = vmatprep.mubr.msk.bf16.mxu1 %vm4447_vm1, %v4446_v10 }
 0x229   : > { %v419_v25 = vpop.f32.mrb[0].mxu1  ;;  %v535_v26 = vpop.f32.mrb[0].mxu0 }
 0x22a   : > { %v541_v27 = vpack.c.bf16 %v535_v26, %v535_v26  ;;  %v3786_v28 = vpop.f32.mrb[1].mxu1  ;;  %v3802_v29 = vpop.f32.mrb[1].mxu0  ;;  %v425_v42 = vpack.c.bf16 %v419_v25, %v419_v25 }
 0x22b   : > { %v422_v30 = vpop.f32.mrb[2].mxu1  ;;  %v538_v31 = vpop.f32.mrb[2].mxu0 }
 0x22c   : > { %v613_v32 = vsel %vm611_vm2, %v541_v27, 0  ;;  %v3787_v33 = vpop.f32.mrb[3].mxu1  ;;  %v3803_v34 = vpop.f32.mrb[3].mxu0 }
 0x22d   : > { %3811 = vmatpush3.bf16.msra.mxu0 %v613_v32 }
 0x22e   : > { %3824 = vmatprep.subr.bf16.mxu0 %v4446_v10 }
 0x231   : > { %v477_v35 = vpop.f32.mrb[4].mxu1 }
 0x232   : > { %v483_v36 = vpack.c.bf16 %v477_v35, %v477_v35  ;;  %v3794_v37 = vpop.f32.mrb[5].mxu1 }
 0x233   : > { %v480_v38 = vpop.f32.mrb[6].mxu1 }
 0x234   : > { %v547_v39 = vsel %vm542_vm3, %v483_v36, 0  ;;  %v3795_v40 = vpop.f32.mrb[7].mxu1  ;;  %v4263_v36 = vld [vmem:[%s5192_s5 + $0x20] sm:$0xff]  }
 0x235   : > { %3805 = vmatpush3.bf16.xpose.msra.mxu1 %v547_v39  ;;  %v4264_v39 = vld [vmem:[%s5192_s5 + $0x28] sm:$0xff]   ;;  %v4265_v40 = vld [vmem:[%s5192_s5 + $0xa0] sm:$0xff]  }
 0x236   : > { %3816 = vmatprep.subr.bf16.mxu1 %v4446_v10 }
 0x23c   : > { %3807 = vmatmul.mubr.msk.bf16.vlgmr.msra.gmra.mrb[8].mxu1 %vm542_vm3, %v425_v42  ;;  %v4267_v42 = vld [vmem:[%s5192_s5 + $0x120] sm:$0xff]  }
 0x23d   : > { %3817 = vmatpush3.bf16.msra.mxu1 %v4257_v41  ;;  %3820 = vmatprep.mubr.msk.bf16.mxu1 %vm4447_vm1, %v4446_v10  ;;  %v4266_v41 = vld [vmem:[%s5192_s5 + $0xa8] sm:$0xff]  }
 0x23e   : > { %3818 = vmatprep.subr.bf16.mxu1 %v4446_v10 }
 0x241   : > { %3819 = vmatpush3.bf16.msra.mxu1 %v4258_v43  ;;  %v4269_v43 = vld [vmem:[%s5193_s6 + $0x20] sm:$0xff]  }
 0x242   : > { %3832 = vmatprep.subr.bf16.mxu1 %v4446_v10 }
 0x244   : > { %3821 = vmatmul.mubr.msk.bf16.vlgmr.msra.gmra.mrb[12].mxu1 %vm334_vm0, %v4588_v23 }
 0x245   : > { %3833 = vmatpush3.bf16.msra.mxu1 %v4259_v44  ;;  %3836 = vmatprep.mubr.msk.bf16.mxu1 %vm4447_vm1, %v4446_v10  ;;  %v4270_v44 = vld [vmem:[%s5193_s6 + $0x28] sm:$0xff]  }
 0x246   : > { %3834 = vmatprep.subr.bf16.mxu1 %v4446_v10 }
 0x249   : > { %3835 = vmatpush3.bf16.msra.mxu1 %v4260_v45  ;;  %v4268_v45 = vld [vmem:[%s5192_s5 + $0x128] sm:$0xff]  }
 0x24a   : > { %3846 = vmatprep.subr.bf16.mxu1 %v4446_v10 }
 0x24c   : > { %3837 = vmatmul.mubr.msk.bf16.vlgmr.msra.gmra.mrb[16].mxu1 %vm334_vm0, %v4588_v23 }
 0x24d   : > { %3848 = vmatprep.mubr.msk.bf16.mxu1 %vm4447_vm1, %v4446_v10 }
 0x30f   : > { %v583_v52 = vpop.f32.mrb[8].mxu1 }
 0x310   : > { %v595_v53 = vsel %vm594_vm5, %v583_v52, -1e+09  ;;  %v3808_v54 = vpop.f32.mrb[9].mxu1 }
 0x311   : > { %v586_v55 = vpop.f32.mrb[10].mxu1  ;;  %v597_v56 = vsel %vm596_vm6, %v595_v53, -inf }
 0x312   : > { %598 = vmax.xlane.f32.xlu1 %v597_v56  ;;  %v3809_v57 = vpop.f32.mrb[11].mxu1  ;;  %v4273_v56 = vld [vmem:[%s5193_s6] sm:$0xff]  }
 0x317   : > { %v716_v58 = vpop.f32.mrb[12].mxu1 }
 0x318   : > { %v3822_v59 = vpop.f32.mrb[13].mxu1  ;;  %v722_v24 = vpack.c.bf16 %v716_v58, %v716_v58 }
 0x319   : > { %v719_v60 = vpop.f32.mrb[14].mxu1  ;;  %v4274_v59 = vld [vmem:[%s5193_s6 + $0x8] sm:$0xff]  }
 0x31a   : > { %v3823_v61 = vpop.f32.mrb[15].mxu1 }
 0x31f   : > { %v832_v62 = vpop.f32.mrb[16].mxu1 }
 0x320   : > { %v838_v63 = vpack.c.bf16 %v832_v62, %v832_v62  ;;  %v3838_v1 = vpop.f32.mrb[17].mxu1 }
 0x321   : > { %v835_v2 = vpop.f32.mrb[18].mxu1 }
 0x322   : > { %v901_v3 = vsel %vm611_vm2, %v838_v63, 0  ;;  %v3839_v4 = vpop.f32.mrb[19].mxu1  ;;  %v4275_v63 = vld [vmem:[%s5193_s6 + $0x10] sm:$0xff]  }
 0x323   : > { %3847 = vmatpush3.bf16.msra.mxu1 %v901_v3  ;;  %v4276_v3 = vld [vmem:[%s5193_s6 + $0x18] sm:$0xff]  }
 0x324   : > { %3876 = vmatprep.subr.bf16.mxu1 %v4446_v10 }
 0x39f   : > { %v599_v5 = vpop.xlane.xlu1 %598 }
 0x3a0   : > { %v600_v6 = vsub.f32 %v595_v53, %v599_v5 }
 0x3a2   : > { %v601_v7 = vmul.f32 1.442695, %v600_v6 }
 0x3a4   : > { %4333 = vpow2.f32 %v601_v7 }
 0x3ae   : > { %v4334_v8 = vpop.eup %4333 }
 0x3af   : > { %v607_v11 = vpack.c.bf16 %v4334_v8, %v4334_v8  ;;  %v603_v31 = vsel %vm596_vm6, %v4334_v8, 0.0 }
 0x3b1   : > { %3813 = vmatmul.mubr.msk.bf16.vlgmr.msra.gmra.mrb[4].mxu0 %vm596_vm6, %v607_v11 }
 0x3b2   : > { %3825 = vmatpush3.bf16.msra.mxu0 %v4261_v9  ;;  %3828 = vmatprep.mubr.msk.bf16.mxu0 %vm4447_vm1, %v4446_v10 }
 0x3b3   : > { %3826 = vmatprep.subr.bf16.mxu0 %v4446_v10 }
 0x3b6   : > { %3827 = vmatpush3.bf16.msra.mxu0 %v4262_v12 }
 0x3b7   : > { %3840 = vmatprep.subr.bf16.mxu0 %v4446_v10 }
 0x3b9   : > { %3829 = vmatmul.mubr.msk.bf16.vlgmr.msra.gmra.mrb[8].mxu0 %vm334_vm0, %v4588_v23 }
 0x3ba   : > { %3842 = vmatprep.mubr.msk.bf16.mxu0 %vm4447_vm1, %v4446_v10 }
 0x484   : > { %v4666_v13 = vpop.f32.mrb[4].mxu0 }
 0x485   : > { %v3814_v14 = vpop.f32.mrb[5].mxu0 }
 0x486   : > { %v652_v15 = vpop.f32.mrb[6].mxu0  ;;  %v4277_v14 = vld [vmem:[%s5192_s5 + $0x30] sm:$0xff]  }
 0x487   : > { %v3815_v16 = vpop.f32.mrb[7].mxu0 }
 0x48c   : > { %v774_v17 = vpop.f32.mrb[8].mxu0 }
 0x48d   : > { %v780_v18 = vpack.c.bf16 %v774_v17, %v774_v17  ;;  %v3830_v19 = vpop.f32.mrb[9].mxu0 }
 0x48e   : > { %v777_v20 = vpop.f32.mrb[10].mxu0 }
 0x48f   : > { %v843_v21 = vsel %vm542_vm3, %v780_v18, 0  ;;  %v3831_v22 = vpop.f32.mrb[11].mxu0 }
 0x490   : > { %3841 = vmatpush3.bf16.xpose.msra.mxu0 %v843_v21  ;;  %v4278_v21 = vld [vmem:[%s5192_s5 + $0x38] sm:$0xff]   ;;  %v4279_v22 = vld [vmem:[%s5192_s5 + $0xb0] sm:$0xff]  }
 0x491   : > { %3852 = vmatprep.subr.bf16.mxu0 %v4446_v10 }
 0x497   : > { %3843 = vmatmul.mubr.msk.bf16.vlgmr.msra.gmra.mrb[12].mxu0 %vm542_vm3, %v722_v24  ;;  %v4280_v24 = vld [vmem:[%s5192_s5 + $0xb8] sm:$0xff]  }
 0x498   : > { %3860 = vmatprep.mubr.msk.bf16.mxu0 %vm4447_vm1, %v4446_v10  ;;  %3853 = vmatpush3.bf16.msra.mxu0 %v4269_v43 }
 0x499   : > { %3854 = vmatprep.subr.bf16.mxu0 %v4446_v10 }
 0x49c   : > { %3855 = vmatpush3.bf16.msra.mxu0 %v4270_v44 }
 0x49d   : > { %3856 = vmatprep.subr.bf16.mxu0 %v4446_v10 }
 0x4a0   : > { %3857 = vmatpush3.bf16.msra.mxu0 %v4271_v46 }
 0x4a1   : > { %3858 = vmatprep.subr.bf16.mxu0 %v4446_v10 }
 0x4a4   : > { %3859 = vmatpush3.bf16.msra.mxu0 %v4272_v47 }
 0x4a5   : > { %3864 = vmatprep.subr.bf16.mxu0 %v4446_v10 }
 0x56a   : > { %v879_v25 = vpop.f32.mrb[12].mxu0 }
 0x56b   : > { %v885_v26 = vsel %vm594_vm5, %v879_v25, -1e+09  ;;  %v3844_v27 = vpop.f32.mrb[13].mxu0  ;;  %v4281_v25 = vld [vmem:[%s5192_s5 + $0x130] sm:$0xff]  }
 0x56c   : > { %v882_v28 = vpop.f32.mrb[14].mxu0  ;;  %v886_v29 = vsel %vm596_vm6, %v885_v26, -inf }
 0x56d   : > { %887 = vmax.xlane.f32.xlu1 %v886_v29  ;;  %v3845_v30 = vpop.f32.mrb[15].mxu0 }
 0x571   : > { %604 = vadd.xlane.f32.xlu1 %v603_v31 }
 0x5fa   : > { %v888_v32 = vpop.xlane.xlu1 %887 }
 0x5fb   : > { %v889_v33 = vsub.f32 %v885_v26, %v888_v32  ;;  %v4282_v26 = vld [vmem:[%s5192_s5 + $0x138] sm:$0xff]  }
 0x5fd   : > { %v890_v34 = vmul.f32 1.442695, %v889_v33 }
 0x5fe   : > { %v605_v49 = vpop.xlane.xlu1 %604 }
 0x5ff   : > { %4335 = vpow2.f32 %v890_v34 }
 0x609   : > { %v4336_v35 = vpop.eup %4335 }
 0x60a   : > { %v892_v37 = vsel %vm596_vm6, %v4336_v35, 0.0  ;;  %v896_v38 = vpack.c.bf16 %v4336_v35, %v4336_v35 }
 0x60b   : > { %893 = vadd.xlane.f32.xlu0 %v892_v37 }
 0x60c   : > { %3849 = vmatmul.mubr.msk.bf16.vlgmr.msra.gmra.mrb[20].mxu1 %vm596_vm6, %v896_v38 }
 0x60d   : > { %3877 = vmatpush3.bf16.msra.mxu1 %v4263_v36  ;;  %3880 = vmatprep.mubr.msk.bf16.mxu1 %vm4447_vm1, %v4446_v10 }
 0x60e   : > { %3878 = vmatprep.subr.bf16.mxu1 %v4446_v10 }
 0x611   : > { %3879 = vmatpush3.bf16.msra.mxu1 %v4264_v39 }
 0x612   : > { %3884 = vmatprep.subr.bf16.mxu1 %v4446_v10 }
 0x614   : > { %3881 = vmatmul.mubr.msk.bf16.vlgmr.msra.gmra.mrb[24].mxu1 %vm334_vm0, %v4588_v23 }
 0x615   : > { %3885 = vmatpush3.bf16.msra.mxu1 %v4265_v40  ;;  %3888 = vmatprep.mubr.msk.bf16.mxu1 %vm4447_vm1, %v4446_v10 }
 0x616   : > { %3886 = vmatprep.subr.bf16.mxu1 %v4446_v10 }
 0x619   : > { %3887 = vmatpush3.bf16.msra.mxu1 %v4266_v41 }
 0x61a   : > { %3892 = vmatprep.subr.bf16.mxu1 %v4446_v10 }
 0x61c   : > { %3889 = vmatmul.mubr.msk.bf16.vlgmr.msra.gmra.mrb[28].mxu1 %vm334_vm0, %v4588_v23 }
 0x61d   : > { %3893 = vmatpush3.bf16.msra.mxu1 %v4267_v42  ;;  %3896 = vmatprep.mubr.msk.bf16.mxu1 %vm4447_vm1, %v4446_v10 }
 0x61e   : > { %3894 = vmatprep.subr.bf16.mxu1 %v4446_v10 }
 0x621   : > { %3895 = vmatpush3.bf16.msra.mxu1 %v4268_v45 }
 0x622   : > { %3900 = vmatprep.subr.bf16.mxu1 %v4446_v10 }
 0x624   : > { %3897 = vmatmul.mubr.msk.bf16.vlgmr.msra.gmra.mrb[32].mxu1 %vm334_vm0, %v4588_v23 }
 0x625   : > { %3902 = vmatprep.mubr.msk.bf16.mxu1 %vm4447_vm1, %v4446_v10 }
 0x698   : > { %v894_v48 = vpop.xlane.xlu0 %893 }
 0x699   : > { %4337 = vrcp.f32 %v894_v48 }
 0x69a   : > { %4339 = vrcp.f32 %v605_v49 }
 0x6a3   : > { %v4338_v50 = vpop.eup %4337 }
 0x6a4   : > { %v4340_v2 = vpop.eup %4339 }
 0x6a5   : > { %v655_v4 = vmul.f32 %v4340_v2, %v4666_v13 }
 0x6a7   : > { %v656_v12 = vpack.c.bf16 %v655_v4, %v655_v4 }
 0x6df   : > { %v937_v52 = vpop.f32.mrb[20].mxu1 }
 0x6e0   : > { %v943_v53 = vmul.f32 %v4338_v50, %v937_v52  ;;  %v3850_v54 = vpop.f32.mrb[21].mxu1 }
 0x6e1   : > { %v940_v55 = vpop.f32.mrb[22].mxu1  ;;  %v4283_v54 = vld [vmem:[%s5193_s6 + $0x40] sm:$0xff]  }
 0x6e2   : > { %v944_v57 = vpack.c.bf16 %v943_v53, %v943_v53  ;;  %v3851_v58 = vpop.f32.mrb[23].mxu1  ;;  %v4284_v55 = vld [vmem:[%s5193_s6 + $0x48] sm:$0xff]  }
 0x6e4   : > { %3861 = vmatmul.mubr.msk.bf16.vlgmr.msra.gmra.mrb[16].mxu0 %vm542_vm3, %v944_v57  ;;  %v4286_v57 = vld [vmem:[%s5193_s6 + $0x58] sm:$0xff]  }
 0x6e5   : > { %3865 = vmatpush3.bf16.msra.mxu0 %v4273_v56  ;;  %3872 = vmatprep.mubr.msk.bf16.mxu0 %vm4447_vm1, %v4446_v10  ;;  %v4285_v56 = vld [vmem:[%s5193_s6 + $0x50] sm:$0xff]  }
 0x6e6   : > { %3866 = vmatprep.subr.bf16.mxu0 %v4446_v10 }
 0x6e7   : > { %v1139_v60 = vpop.f32.mrb[24].mxu1 }
 0x6e8   : > { %v3882_v61 = vpop.f32.mrb[25].mxu1  ;;  %v1145_v15 = vpack.c.bf16 %v1139_v60, %v1139_v60 }
 0x6e9   : > { %3867 = vmatpush3.bf16.msra.mxu0 %v4274_v59  ;;  %v1142_v62 = vpop.f32.mrb[26].mxu1 }
 0x6ea   : > { %v3883_v1 = vpop.f32.mrb[27].mxu1  ;;  %3868 = vmatprep.subr.bf16.mxu0 %v4446_v10 }
 0x6ed   : > { %3869 = vmatpush3.bf16.msra.mxu0 %v4275_v63 }
 0x6ee   : > { %3870 = vmatprep.subr.bf16.mxu0 %v4446_v10 }
 0x6ef   : > { %v1197_v5 = vpop.f32.mrb[28].mxu1 }
 0x6f0   : > { %v1203_v6 = vpack.c.bf16 %v1197_v5, %v1197_v5  ;;  %v3890_v7 = vpop.f32.mrb[29].mxu1 }
 0x6f1   : > { %3871 = vmatpush3.bf16.msra.mxu0 %v4276_v3  ;;  %v1200_v8 = vpop.f32.mrb[30].mxu1 }
 0x6f2   : > { %v1266_v9 = vsel %vm542_vm3, %v1203_v6, 0  ;;  %v3891_v11 = vpop.f32.mrb[31].mxu1  ;;  %3906 = vmatprep.subr.bf16.mxu0 %v4446_v10 }
 0x6f3   : > { %3901 = vmatpush3.bf16.xpose.msra.mxu1 %v1266_v9 }
 0x6f4   : > { %3873 = vmatmul.mubr.msk.bf16.vlgmr.msra.gmra.mrb[16].mxu0 %vm542_vm3, %v656_v12  ;;  %3924 = vmatprep.subr.bf16.mxu1 %v4446_v10 }
 0x6f5   : > { %3908 = vmatprep.mubr.msk.bf16.mxu0 %vm4447_vm1, %v4446_v10 }
 0x6f7   : > { %v1255_v13 = vpop.f32.mrb[32].mxu1 }
 0x6f8   : > { %v1261_v16 = vpack.c.bf16 %v1255_v13, %v1255_v13  ;;  %v3898_v17 = vpop.f32.mrb[33].mxu1 }
 0x6f9   : > { %v1258_v18 = vpop.f32.mrb[34].mxu1  ;;  %v4287_v17 = vld [vmem:[%s5192_s5 + $0x40] sm:$0xff]  }
 0x6fa   : > { %v1324_v19 = vsel %vm611_vm2, %v1261_v16, 0  ;;  %v3899_v20 = vpop.f32.mrb[35].mxu1  ;;  %3903 = vmatmul.mubr.msk.bf16.vlgmr.msra.gmra.mrb[36].mxu1 %vm542_vm3, %v1145_v15 }
 0x6fb   : > { %3907 = vmatpush3.bf16.msra.mxu0 %v1324_v19  ;;  %3925 = vmatpush3.bf16.msra.mxu1 %v4277_v14  ;;  %v4288_v20 = vld [vmem:[%s5192_s5 + $0x48] sm:$0xff]  }
 0x6fc   : > { %3926 = vmatprep.subr.bf16.mxu1 %v4446_v10  ;;  %3928 = vmatprep.mubr.msk.bf16.mxu1 %vm4447_vm1, %v4446_v10 }
 0x6fd   : > { %3912 = vmatprep.subr.bf16.mxu0 %v4446_v10 }
 0x6ff   : > { %3927 = vmatpush3.bf16.msra.mxu1 %v4278_v21  ;;  %v4289_v21 = vld [vmem:[%s5192_s5 + $0xc0] sm:$0xff]  }
 0x700   : > { %3932 = vmatprep.subr.bf16.mxu1 %v4446_v10 }
 0x702   : > { %3929 = vmatmul.mubr.msk.bf16.vlgmr.msra.gmra.mrb[40].mxu1 %vm334_vm0, %v4588_v23 }
 0x703   : > { %3933 = vmatpush3.bf16.msra.mxu1 %v4279_v22  ;;  %3936 = vmatprep.mubr.msk.bf16.mxu1 %vm4447_vm1, %v4446_v10  ;;  %v4290_v22 = vld [vmem:[%s5192_s5 + $0xc8] sm:$0xff]  }
 0x704   : > { %3934 = vmatprep.subr.bf16.mxu1 %v4446_v10 }
 0x707   : > { %3935 = vmatpush3.bf16.msra.mxu1 %v4280_v24  ;;  %v4291_v24 = vld [vmem:[%s5193_s6 + $0x60] sm:$0xff]  }
 0x708   : > { %3940 = vmatprep.subr.bf16.mxu1 %v4446_v10 }
 0x70a   : > { %3937 = vmatmul.mubr.msk.bf16.vlgmr.msra.gmra.mrb[44].mxu1 %vm334_vm0, %v4588_v23 }
 0x70b   : > { %3941 = vmatpush3.bf16.msra.mxu1 %v4281_v25  ;;  %3944 = vmatprep.mubr.msk.bf16.mxu1 %vm4447_vm1, %v4446_v10  ;;  %v4292_v25 = vld [vmem:[%s5193_s6 + $0x68] sm:$0xff]  }
 0x70c   : > { %3942 = vmatprep.subr.bf16.mxu1 %v4446_v10 }
 0x70f   : > { %3943 = vmatpush3.bf16.msra.mxu1 %v4282_v26  ;;  %v4293_v26 = vld [vmem:[%s5193_s6 + $0x70] sm:$0xff]  }
 0x710   : > { %3954 = vmatprep.subr.bf16.mxu1 %v4446_v10 }
 0x712   : > { %3945 = vmatmul.mubr.msk.bf16.vlgmr.msra.gmra.mrb[48].mxu1 %vm334_vm0, %v4588_v23 }
 0x713   : > { %3956 = vmatprep.mubr.msk.bf16.mxu1 %vm4447_vm1, %v4446_v10 }
 0x7cd   : > { %v1302_v27 = vpop.f32.mrb[36].mxu1 }
 0x7ce   : > { %v1308_v28 = vsel %vm594_vm5, %v1302_v27, -1e+09  ;;  %v3904_v29 = vpop.f32.mrb[37].mxu1  ;;  %v4294_v27 = vld [vmem:[%s5193_s6 + $0x78] sm:$0xff]  }
 0x7cf   : > { %v1305_v30 = vpop.f32.mrb[38].mxu1  ;;  %v1309_v31 = vsel %vm596_vm6, %v1308_v28, -inf }
 0x7d0   : > { %1310 = vmax.xlane.f32.xlu0 %v1309_v31  ;;  %v3905_v32 = vpop.f32.mrb[39].mxu1 }
 0x7d5   : > { %v1496_v33 = vpop.f32.mrb[40].mxu1 }
 0x7d6   : > { %v3930_v34 = vpop.f32.mrb[41].mxu1  ;;  %v1502_v5 = vpack.c.bf16 %v1496_v33, %v1496_v33 }
 0x7d7   : > { %v1499_v35 = vpop.f32.mrb[42].mxu1  ;;  %v4295_v34 = vld [vmem:[%s5192_s5 + $0x140] sm:$0xff]  }
 0x7d8   : > { %v3931_v36 = vpop.f32.mrb[43].mxu1 }
 0x7dd   : > { %v1554_v37 = vpop.f32.mrb[44].mxu1 }
 0x7de   : > { %v3938_v38 = vpop.f32.mrb[45].mxu1  ;;  %v1560_v61 = vpack.c.bf16 %v1554_v37, %v1554_v37  ;;  %v4296_v37 = vld [vmem:[%s5192_s5 + $0x148] sm:$0xff]  }
 0x7df   : > { %v1557_v39 = vpop.f32.mrb[46].mxu1 }
 0x7e0   : > { %v3939_v40 = vpop.f32.mrb[47].mxu1  ;;  %v1623_v4 = vsel %vm542_vm3, %v1560_v61, 0 }
 0x7e5   : > { %v1612_v41 = vpop.f32.mrb[48].mxu1 }
 0x7e6   : > { %v1618_v42 = vpack.c.bf16 %v1612_v41, %v1612_v41  ;;  %v3946_v43 = vpop.f32.mrb[49].mxu1 }
 0x7e7   : > { %v1615_v44 = vpop.f32.mrb[50].mxu1 }
 0x7e8   : > { %v1681_v45 = vsel %vm611_vm2, %v1618_v42, 0  ;;  %v3947_v46 = vpop.f32.mrb[51].mxu1 }
 0x7e9   : > { %3955 = vmatpush3.bf16.msra.mxu1 %v1681_v45 }
 0x7ea   : > { %3972 = vmatprep.subr.bf16.mxu1 %v4446_v10 }
 0x85d   : > { %v1311_v47 = vpop.xlane.xlu0 %1310 }
 0x85e   : > { %v1312_v48 = vsub.f32 %v1308_v28, %v1311_v47 }
 0x860   : > { %v1313_v49 = vmul.f32 1.442695, %v1312_v48  ;;  %v4297_v48 = vld [vmem:[%s5192_s5 + $0x50] sm:$0xff]  }
 0x862   : > { %4341 = vpow2.f32 %v1313_v49 }
 0x86c   : > { %v4342_v50 = vpop.eup %4341 }
 0x86d   : > { %v1315_v52 = vsel %vm596_vm6, %v4342_v50, 0.0  ;;  %v1319_v53 = vpack.c.bf16 %v4342_v50, %v4342_v50  ;;  %v4298_v50 = vld [vmem:[%s5192_s5 + $0x58] sm:$0xff]  }
 0x86e   : > { %1316 = vadd.xlane.f32.xlu1 %v1315_v52  ;;  %v4299_v52 = vld [vmem:[%s5192_s5 + $0xd0] sm:$0xff]  }
 0x86f   : > { %3909 = vmatmul.mubr.msk.bf16.vlgmr.msra.gmra.mrb[20].mxu0 %vm596_vm6, %v1319_v53  ;;  %v4300_v53 = vld [vmem:[%s5192_s5 + $0xd8] sm:$0xff]  }
 0x870   : > { %3920 = vmatprep.mubr.msk.bf16.mxu0 %vm4447_vm1, %v4446_v10  ;;  %3913 = vmatpush3.bf16.msra.mxu0 %v4283_v54  ;;  %v4301_v54 = vld [vmem:[%s5192_s5 + $0x150] sm:$0xff]  }
 0x871   : > { %3914 = vmatprep.subr.bf16.mxu0 %v4446_v10 }
 0x874   : > { %3915 = vmatpush3.bf16.msra.mxu0 %v4284_v55  ;;  %v4302_v55 = vld [vmem:[%s5192_s5 + $0x158] sm:$0xff]  }
 0x875   : > { %3916 = vmatprep.subr.bf16.mxu0 %v4446_v10 }
 0x878   : > { %3917 = vmatpush3.bf16.msra.mxu0 %v4285_v56 }
 0x879   : > { %3918 = vmatprep.subr.bf16.mxu0 %v4446_v10 }
 0x87c   : > { %3919 = vmatpush3.bf16.msra.mxu0 %v4286_v57 }
 0x87d   : > { %3948 = vmatprep.subr.bf16.mxu0 %v4446_v10 }
 0x8fb   : > { %v1317_v58 = vpop.xlane.xlu1 %1316 }
 0x8fc   : > { %4343 = vrcp.f32 %v1317_v58 }
 0x906   : > { %v4344_v59 = vpop.eup %4343 }
 0x942   : > { %v1360_v60 = vpop.f32.mrb[20].mxu0 }
 0x943   : > { %v1366_v62 = vmul.f32 %v4344_v59, %v1360_v60  ;;  %v3910_v63 = vpop.f32.mrb[21].mxu0 }
 0x944   : > { %v1363_v1 = vpop.f32.mrb[22].mxu0 }
 0x945   : > { %v1367_v2 = vpack.c.bf16 %v1366_v62, %v1366_v62  ;;  %v3911_v3 = vpop.f32.mrb[23].mxu0 }
 0x947   : > { %3921 = vmatmul.mubr.msk.bf16.vlgmr.msra.gmra.mrb[16].mxu0 %vm542_vm3, %v1367_v2 }
 0x948   : > { %3949 = vmatpush3.bf16.xpose.msra.mxu0 %v1623_v4  ;;  %3950 = vmatprep.mubr.msk.bf16.mxu0 %vm4447_vm1, %v4446_v10 }
 0x949   : > { %3960 = vmatprep.subr.bf16.mxu0 %v4446_v10 }
 0x94f   : > { %3951 = vmatmul.mubr.msk.bf16.vlgmr.msra.gmra.mrb[24].mxu0 %vm542_vm3, %v1502_v5 }
 0x950   : > { %3968 = vmatprep.mubr.msk.bf16.mxu0 %vm4447_vm1, %v4446_v10  ;;  %3961 = vmatpush3.bf16.msra.mxu0 %v4291_v24 }
 0x951   : > { %3962 = vmatprep.subr.bf16.mxu0 %v4446_v10 }
 0x954   : > { %3963 = vmatpush3.bf16.msra.mxu0 %v4292_v25 }
 0x955   : > { %3964 = vmatprep.subr.bf16.mxu0 %v4446_v10 }
 0x958   : > { %3965 = vmatpush3.bf16.msra.mxu0 %v4293_v26 }
 0x959   : > { %3966 = vmatprep.subr.bf16.mxu0 %v4446_v10 }
 0x95c   : > { %3967 = vmatpush3.bf16.msra.mxu0 %v4294_v27  ;;  %v4303_v27 = vld [vmem:[%s5193_s6 + $0x80] sm:$0xff]  }
 0x95d   : > { %3988 = vmatprep.subr.bf16.mxu0 %v4446_v10 }
 0xa22   : > { %v1659_v6 = vpop.f32.mrb[24].mxu0 }
 0xa23   : > { %v1665_v7 = vsel %vm594_vm5, %v1659_v6, -1e+09  ;;  %v3952_v8 = vpop.f32.mrb[25].mxu0 }
 0xa24   : > { %v1662_v9 = vpop.f32.mrb[26].mxu0  ;;  %v1666_v11 = vsel %vm596_vm6, %v1665_v7, -inf }
 0xa25   : > { %1667 = vmax.xlane.f32.xlu0 %v1666_v11  ;;  %v3953_v12 = vpop.f32.mrb[27].mxu0 }
 0xab2   : > { %v1668_v13 = vpop.xlane.xlu0 %1667 }
 0xab3   : > { %v1669_v14 = vsub.f32 %v1665_v7, %v1668_v13 }
 0xab5   : > { %v1670_v15 = vmul.f32 1.442695, %v1669_v14 }
 0xab7   : > { %4345 = vpow2.f32 %v1670_v15 }
 0xac1   : > { %v4346_v16 = vpop.eup %4345 }
 0xac2   : > { %v1672_v18 = vsel %vm596_vm6, %v4346_v16, 0.0  ;;  %v1676_v19 = vpack.c.bf16 %v4346_v16, %v4346_v16 }
 0xac3   : > { %1673 = vadd.xlane.f32.xlu1 %v1672_v18 }
 0xac4   : > { %3957 = vmatmul.mubr.msk.bf16.vlgmr.msra.gmra.mrb[52].mxu1 %vm596_vm6, %v1676_v19 }
 0xac5   : > { %3973 = vmatpush3.bf16.msra.mxu1 %v4287_v17  ;;  %3976 = vmatprep.mubr.msk.bf16.mxu1 %vm4447_vm1, %v4446_v10 }
 0xac6   : > { %3974 = vmatprep.subr.bf16.mxu1 %v4446_v10 }
 0xac9   : > { %3975 = vmatpush3.bf16.msra.mxu1 %v4288_v20 }
 0xaca   : > { %3980 = vmatprep.subr.bf16.mxu1 %v4446_v10 }
 0xacc   : > { %3977 = vmatmul.mubr.msk.bf16.vlgmr.msra.gmra.mrb[56].mxu1 %vm334_vm0, %v4588_v23 }
 0xacd   : > { %3981 = vmatpush3.bf16.msra.mxu1 %v4289_v21  ;;  %3984 = vmatprep.mubr.msk.bf16.mxu1 %vm4447_vm1, %v4446_v10 }
 0xace   : > { %3982 = vmatprep.subr.bf16.mxu1 %v4446_v10 }
 0xad1   : > { %3983 = vmatpush3.bf16.msra.mxu1 %v4290_v22 }
 0xad2   : > { %3996 = vmatprep.subr.bf16.mxu1 %v4446_v10 }
 0xad4   : > { %3985 = vmatmul.mubr.msk.bf16.vlgmr.msra.gmra.mrb[60].mxu1 %vm334_vm0, %v4588_v23 }
 0xad5   : > { %3998 = vmatprep.mubr.msk.bf16.mxu1 %vm4447_vm1, %v4446_v10 }
 0xb50   : > { %v1674_v28 = vpop.xlane.xlu1 %1673 }
 0xb51   : > { %4347 = vrcp.f32 %v1674_v28  ;;  %v4304_v28 = vld [vmem:[%s5193_s6 + $0x88] sm:$0xff]  }
 0xb5b   : > { %v4348_v29 = vpop.eup %4347 }
 0xb97   : > { %v1717_v30 = vpop.f32.mrb[52].mxu1 }
 0xb98   : > { %v1723_v31 = vmul.f32 %v4348_v29, %v1717_v30  ;;  %v3958_v32 = vpop.f32.mrb[53].mxu1  ;;  %v4305_v29 = vld [vmem:[%s5193_s6 + $0x90] sm:$0xff]   ;;  %v4306_v30 = vld [vmem:[%s5193_s6 + $0x98] sm:$0xff]  }
 0xb99   : > { %v1720_v33 = vpop.f32.mrb[54].mxu1 }
 0xb9a   : > { %v1724_v35 = vpack.c.bf16 %v1723_v31, %v1723_v31  ;;  %v3959_v36 = vpop.f32.mrb[55].mxu1 }
 0xb9c   : > { %3969 = vmatmul.mubr.msk.bf16.vlgmr.msra.gmra.mrb[16].mxu0 %vm542_vm3, %v1724_v35 }
 0xb9d   : > { %3989 = vmatpush3.bf16.msra.mxu0 %v4295_v34  ;;  %3992 = vmatprep.mubr.msk.bf16.mxu0 %vm4447_vm1, %v4446_v10 }
 0xb9e   : > { %3990 = vmatprep.subr.bf16.mxu0 %v4446_v10 }
 0xb9f   : > { %v1853_v38 = vpop.f32.mrb[56].mxu1 }
 0xba0   : > { %v3978_v39 = vpop.f32.mrb[57].mxu1  ;;  %v1859_v49 = vpack.c.bf16 %v1853_v38, %v1853_v38 }
 0xba1   : > { %v1856_v40 = vpop.f32.mrb[58].mxu1  ;;  %3991 = vmatpush3.bf16.msra.mxu0 %v4296_v37 }
 0xba2   : > { %v3979_v41 = vpop.f32.mrb[59].mxu1  ;;  %4002 = vmatprep.subr.bf16.mxu0 %v4446_v10 }
 0xba4   : > { %3993 = vmatmul.mubr.msk.bf16.vlgmr.msra.gmra.mrb[28].mxu0 %vm334_vm0, %v4588_v23 }
 0xba5   : > { %4004 = vmatprep.mubr.msk.bf16.mxu0 %vm4447_vm1, %v4446_v10 }
 0xba7   : > { %v1911_v42 = vpop.f32.mrb[60].mxu1 }
 0xba8   : > { %v1917_v43 = vpack.c.bf16 %v1911_v42, %v1911_v42  ;;  %v3986_v44 = vpop.f32.mrb[61].mxu1 }
 0xba9   : > { %v1914_v45 = vpop.f32.mrb[62].mxu1 }
 0xbaa   : > { %v1980_v46 = vsel %vm542_vm3, %v1917_v43, 0  ;;  %v3987_v47 = vpop.f32.mrb[63].mxu1 }
 0xbab   : > { %3997 = vmatpush3.bf16.xpose.msra.mxu1 %v1980_v46 }
 0xbac   : > { %4020 = vmatprep.subr.bf16.mxu1 %v4446_v10 }
 0xbb2   : > { %3999 = vmatmul.mubr.msk.bf16.vlgmr.msra.gmra.mrb[64].mxu1 %vm542_vm3, %v1859_v49 }
 0xbb3   : > { %4021 = vmatpush3.bf16.msra.mxu1 %v4297_v48  ;;  %4024 = vmatprep.mubr.msk.bf16.mxu1 %vm4447_vm1, %v4446_v10 }
 0xbb4   : > { %4022 = vmatprep.subr.bf16.mxu1 %v4446_v10 }
 0xbb7   : > { %4023 = vmatpush3.bf16.msra.mxu1 %v4298_v50 }
 0xbb8   : > { %4028 = vmatprep.subr.bf16.mxu1 %v4446_v10 }
 0xbba   : > { %4025 = vmatmul.mubr.msk.bf16.vlgmr.msra.gmra.mrb[68].mxu1 %vm334_vm0, %v4588_v23 }
 0xbbb   : > { %4029 = vmatpush3.bf16.msra.mxu1 %v4299_v52  ;;  %4032 = vmatprep.mubr.msk.bf16.mxu1 %vm4447_vm1, %v4446_v10 }
 0xbbc   : > { %4030 = vmatprep.subr.bf16.mxu1 %v4446_v10 }
 0xbbf   : > { %4031 = vmatpush3.bf16.msra.mxu1 %v4300_v53  ;;  %v4307_v53 = vld [vmem:[%s5192_s5 + $0x60] sm:$0xff]  }
 0xbc0   : > { %4036 = vmatprep.subr.bf16.mxu1 %v4446_v10 }
 0xbc2   : > { %4033 = vmatmul.mubr.msk.bf16.vlgmr.msra.gmra.mrb[72].mxu1 %vm334_vm0, %v4588_v23 }
 0xbc3   : > { %4037 = vmatpush3.bf16.msra.mxu1 %v4301_v54  ;;  %4040 = vmatprep.mubr.msk.bf16.mxu1 %vm4447_vm1, %v4446_v10 }
 0xbc4   : > { %4038 = vmatprep.subr.bf16.mxu1 %v4446_v10 }
 0xbc7   : > { %4039 = vmatpush3.bf16.msra.mxu1 %v4302_v55 }
 0xbc8   : > { %4050 = vmatprep.subr.bf16.mxu1 %v4446_v10 }
 0xbca   : > { %4041 = vmatmul.mubr.msk.bf16.vlgmr.msra.gmra.mrb[76].mxu1 %vm334_vm0, %v4588_v23 }
 0xbcb   : > { %4052 = vmatprep.mubr.msk.bf16.mxu1 %vm4447_vm1, %v4446_v10 }
 0xc77   : > { %v1969_v56 = vpop.f32.mrb[28].mxu0 }
 0xc78   : > { %v1975_v57 = vpack.c.bf16 %v1969_v56, %v1969_v56  ;;  %v3994_v58 = vpop.f32.mrb[29].mxu0  ;;  %v4308_v56 = vld [vmem:[%s5192_s5 + $0x68] sm:$0xff]  }
 0xc79   : > { %v1972_v59 = vpop.f32.mrb[30].mxu0  ;;  %v4310_v58 = vld [vmem:[%s5192_s5 + $0xe8] sm:$0xff]  }
 0xc7a   : > { %v2038_v60 = vsel %vm611_vm2, %v1975_v57, 0  ;;  %v3995_v61 = vpop.f32.mrb[31].mxu0  ;;  %v4309_v57 = vld [vmem:[%s5192_s5 + $0xe0] sm:$0xff]  }
 0xc7b   : > { %4003 = vmatpush3.bf16.msra.mxu0 %v2038_v60  ;;  %v4311_v59 = vld [vmem:[%s5193_s6 + $0xa0] sm:$0xff]   ;;  %v4312_v60 = vld [vmem:[%s5193_s6 + $0xa8] sm:$0xff]   ;;  %v4313_v61 = vld [vmem:[%s5193_s6 + $0xb0] sm:$0xff]  }
 0xc7c   : > { %4008 = vmatprep.subr.bf16.mxu0 %v4446_v10 }
 0xc85   : > { %v2016_v62 = vpop.f32.mrb[64].mxu1 }
 0xc86   : > { %v2022_v63 = vsel %vm594_vm5, %v2016_v62, -1e+09  ;;  %v4000_v1 = vpop.f32.mrb[65].mxu1  ;;  %v4314_v62 = vld [vmem:[%s5193_s6 + $0xb8] sm:$0xff]  }
 0xc87   : > { %v2019_v2 = vpop.f32.mrb[66].mxu1  ;;  %v2023_v3 = vsel %vm596_vm6, %v2022_v63, -inf }
 0xc88   : > { %2024 = vmax.xlane.f32.xlu0 %v2023_v3  ;;  %v4001_v4 = vpop.f32.mrb[67].mxu1 }
 0xc8d   : > { %v2210_v5 = vpop.f32.mrb[68].mxu1 }
 0xc8e   : > { %v4026_v6 = vpop.f32.mrb[69].mxu1  ;;  %v2216_v41 = vpack.c.bf16 %v2210_v5, %v2210_v5 }
 0xc8f   : > { %v2213_v7 = vpop.f32.mrb[70].mxu1  ;;  %v4315_v6 = vld [vmem:[%s5192_s5 + $0x160] sm:$0xff]  }
 0xc90   : > { %v4027_v8 = vpop.f32.mrb[71].mxu1 }
 0xc95   : > { %v2268_v9 = vpop.f32.mrb[72].mxu1 }
 0xc96   : > { %v4034_v11 = vpop.f32.mrb[73].mxu1  ;;  %v2274_v34 = vpack.c.bf16 %v2268_v9, %v2268_v9  ;;  %v4316_v9 = vld [vmem:[%s5192_s5 + $0x168] sm:$0xff]  }
 0xc97   : > { %v2271_v12 = vpop.f32.mrb[74].mxu1 }
 0xc98   : > { %v4035_v13 = vpop.f32.mrb[75].mxu1  ;;  %v2337_v40 = vsel %vm542_vm3, %v2274_v34, 0 }
 0xc9d   : > { %v2326_v14 = vpop.f32.mrb[76].mxu1 }
 0xc9e   : > { %v2332_v15 = vpack.c.bf16 %v2326_v14, %v2326_v14  ;;  %v4042_v16 = vpop.f32.mrb[77].mxu1 }
 0xc9f   : > { %v2329_v17 = vpop.f32.mrb[78].mxu1 }
 0xca0   : > { %v2395_v18 = vsel %vm611_vm2, %v2332_v15, 0  ;;  %v4043_v19 = vpop.f32.mrb[79].mxu1 }
 0xca1   : > { %4051 = vmatpush3.bf16.msra.mxu1 %v2395_v18 }
 0xca2   : > { %4068 = vmatprep.subr.bf16.mxu1 %v4446_v10 }
 0xd15   : > { %v2025_v20 = vpop.xlane.xlu0 %2024 }
 0xd16   : > { %v2026_v21 = vsub.f32 %v2022_v63, %v2025_v20 }
 0xd18   : > { %v2027_v22 = vmul.f32 1.442695, %v2026_v21  ;;  %v4317_v21 = vld [vmem:[%s5192_s5 + $0x70] sm:$0xff]  }
 0xd1a   : > { %4349 = vpow2.f32 %v2027_v22 }
 0xd24   : > { %v4350_v24 = vpop.eup %4349 }
 0xd25   : > { %v2029_v25 = vsel %vm596_vm6, %v4350_v24, 0.0  ;;  %v2033_v26 = vpack.c.bf16 %v4350_v24, %v4350_v24  ;;  %v4318_v24 = vld [vmem:[%s5192_s5 + $0x78] sm:$0xff]  }
 0xd26   : > { %2030 = vadd.xlane.f32.xlu1 %v2029_v25  ;;  %v4319_v25 = vld [vmem:[%s5192_s5 + $0xf0] sm:$0xff]  }
 0xd27   : > { %4005 = vmatmul.mubr.msk.bf16.vlgmr.msra.gmra.mrb[32].mxu0 %vm596_vm6, %v2033_v26  ;;  %v4320_v26 = vld [vmem:[%s5192_s5 + $0xf8] sm:$0xff]  }
 0xd28   : > { %4016 = vmatprep.mubr.msk.bf16.mxu0 %vm4447_vm1, %v4446_v10  ;;  %4009 = vmatpush3.bf16.msra.mxu0 %v4303_v27  ;;  %v4321_v27 = vld [vmem:[%s5192_s5 + $0x170] sm:$0xff]  }
 0xd29   : > { %4010 = vmatprep.subr.bf16.mxu0 %v4446_v10 }
 0xd2c   : > { %4011 = vmatpush3.bf16.msra.mxu0 %v4304_v28  ;;  %v4322_v28 = vld [vmem:[%s5192_s5 + $0x178] sm:$0xff]  }
 0xd2d   : > { %4012 = vmatprep.subr.bf16.mxu0 %v4446_v10 }
 0xd30   : > { %4013 = vmatpush3.bf16.msra.mxu0 %v4305_v29 }
 0xd31   : > { %4014 = vmatprep.subr.bf16.mxu0 %v4446_v10 }
 0xd34   : > { %4015 = vmatpush3.bf16.msra.mxu0 %v4306_v30 }
 0xd35   : > { %4044 = vmatprep.subr.bf16.mxu0 %v4446_v10 }
 0xdb3   : > { %v2031_v31 = vpop.xlane.xlu1 %2030 }
 0xdb4   : > { %4351 = vrcp.f32 %v2031_v31 }
 0xdbe   : > { %v4352_v32 = vpop.eup %4351 }
 0xdfa   : > { %v2074_v33 = vpop.f32.mrb[32].mxu0 }
 0xdfb   : > { %v2080_v35 = vmul.f32 %v4352_v32, %v2074_v33  ;;  %v4006_v36 = vpop.f32.mrb[33].mxu0 }
 0xdfc   : > { %v2077_v37 = vpop.f32.mrb[34].mxu0 }
 0xdfd   : > { %v2081_v38 = vpack.c.bf16 %v2080_v35, %v2080_v35  ;;  %v4007_v39 = vpop.f32.mrb[35].mxu0 }
 0xdff   : > { %4017 = vmatmul.mubr.msk.bf16.vlgmr.msra.gmra.mrb[16].mxu0 %vm542_vm3, %v2081_v38 }
 0xe00   : > { %4045 = vmatpush3.bf16.xpose.msra.mxu0 %v2337_v40  ;;  %4046 = vmatprep.mubr.msk.bf16.mxu0 %vm4447_vm1, %v4446_v10 }
 0xe01   : > { %4056 = vmatprep.subr.bf16.mxu0 %v4446_v10 }
 0xe07   : > { %4047 = vmatmul.mubr.msk.bf16.vlgmr.msra.gmra.mrb[36].mxu0 %vm542_vm3, %v2216_v41 }
 0xe08   : > { %4064 = vmatprep.mubr.msk.bf16.mxu0 %vm4447_vm1, %v4446_v10  ;;  %4057 = vmatpush3.bf16.msra.mxu0 %v4311_v59 }
 0xe09   : > { %4058 = vmatprep.subr.bf16.mxu0 %v4446_v10 }
 0xe0c   : > { %4059 = vmatpush3.bf16.msra.mxu0 %v4312_v60 }
 0xe0d   : > { %4060 = vmatprep.subr.bf16.mxu0 %v4446_v10 }
 0xe10   : > { %4061 = vmatpush3.bf16.msra.mxu0 %v4313_v61  ;;  %v4323_v61 = vld [vmem:[%s5193_s6 + $0xc0] sm:$0xff]  }
 0xe11   : > { %4062 = vmatprep.subr.bf16.mxu0 %v4446_v10 }
 0xe14   : > { %4063 = vmatpush3.bf16.msra.mxu0 %v4314_v62  ;;  %v4324_v62 = vld [vmem:[%s5193_s6 + $0xc8] sm:$0xff]  }
 0xe15   : > { %4084 = vmatprep.subr.bf16.mxu0 %v4446_v10 }
 0xeda   : > { %v2373_v42 = vpop.f32.mrb[36].mxu0 }
 0xedb   : > { %v2379_v43 = vsel %vm594_vm5, %v2373_v42, -1e+09  ;;  %v4048_v44 = vpop.f32.mrb[37].mxu0 }
 0xedc   : > { %v2376_v45 = vpop.f32.mrb[38].mxu0  ;;  %v2380_v46 = vsel %vm596_vm6, %v2379_v43, -inf }
 0xedd   : > { %2381 = vmax.xlane.f32.xlu0 %v2380_v46  ;;  %v4049_v47 = vpop.f32.mrb[39].mxu0 }
 0xf6a   : > { %v2382_v48 = vpop.xlane.xlu0 %2381 }
 0xf6b   : > { %v2383_v49 = vsub.f32 %v2379_v43, %v2382_v48 }
 0xf6d   : > { %v2384_v50 = vmul.f32 1.442695, %v2383_v49 }
 0xf6f   : > { %4353 = vpow2.f32 %v2384_v50 }
 0xf79   : > { %v4354_v52 = vpop.eup %4353 }
 0xf7a   : > { %v2386_v54 = vsel %vm596_vm6, %v4354_v52, 0.0  ;;  %v2390_v55 = vpack.c.bf16 %v4354_v52, %v4354_v52 }
 0xf7b   : > { %2387 = vadd.xlane.f32.xlu1 %v2386_v54 }
 0xf7c   : > { %4053 = vmatmul.mubr.msk.bf16.vlgmr.msra.gmra.mrb[80].mxu1 %vm596_vm6, %v2390_v55 }
 0xf7d   : > { %4069 = vmatpush3.bf16.msra.mxu1 %v4307_v53  ;;  %4072 = vmatprep.mubr.msk.bf16.mxu1 %vm4447_vm1, %v4446_v10 }
 0xf7e   : > { %4070 = vmatprep.subr.bf16.mxu1 %v4446_v10 }
 0xf81   : > { %4071 = vmatpush3.bf16.msra.mxu1 %v4308_v56 }
 0xf82   : > { %4076 = vmatprep.subr.bf16.mxu1 %v4446_v10 }
 0xf84   : > { %4073 = vmatmul.mubr.msk.bf16.vlgmr.msra.gmra.mrb[84].mxu1 %vm334_vm0, %v4588_v23 }
 0xf85   : > { %4077 = vmatpush3.bf16.msra.mxu1 %v4309_v57  ;;  %4080 = vmatprep.mubr.msk.bf16.mxu1 %vm4447_vm1, %v4446_v10 }
 0xf86   : > { %4078 = vmatprep.subr.bf16.mxu1 %v4446_v10 }
 0xf89   : > { %4079 = vmatpush3.bf16.msra.mxu1 %v4310_v58 }
 0xf8a   : > { %4092 = vmatprep.subr.bf16.mxu1 %v4446_v10 }
 0xf8c   : > { %4081 = vmatmul.mubr.msk.bf16.vlgmr.msra.gmra.mrb[88].mxu1 %vm334_vm0, %v4588_v23 }
 0xf8d   : > { %4094 = vmatprep.mubr.msk.bf16.mxu1 %vm4447_vm1, %v4446_v10 }
0x1008   : > { %v2388_v63 = vpop.xlane.xlu1 %2387 }
0x1009   : > { %4355 = vrcp.f32 %v2388_v63  ;;  %v4325_v63 = vld [vmem:[%s5193_s6 + $0xd0] sm:$0xff]  }
0x1013   : > { %v4356_v1 = vpop.eup %4355 }
0x104f   : > { %v2431_v2 = vpop.f32.mrb[80].mxu1 }
0x1050   : > { %v2437_v3 = vmul.f32 %v4356_v1, %v2431_v2  ;;  %v4054_v4 = vpop.f32.mrb[81].mxu1  ;;  %v4326_v1 = vld [vmem:[%s5193_s6 + $0xd8] sm:$0xff]  }
0x1051   : > { %v2434_v5 = vpop.f32.mrb[82].mxu1 }
0x1052   : > { %v2438_v7 = vpack.c.bf16 %v2437_v3, %v2437_v3  ;;  %v4055_v8 = vpop.f32.mrb[83].mxu1 }
0x1054   : > { %4065 = vmatmul.mubr.msk.bf16.vlgmr.msra.gmra.mrb[16].mxu0 %vm542_vm3, %v2438_v7 }
0x1055   : > { %4085 = vmatpush3.bf16.msra.mxu0 %v4315_v6  ;;  %4088 = vmatprep.mubr.msk.bf16.mxu0 %vm4447_vm1, %v4446_v10 }
0x1056   : > { %4086 = vmatprep.subr.bf16.mxu0 %v4446_v10 }
0x1057   : > { %v2567_v11 = vpop.f32.mrb[84].mxu1 }
0x1058   : > { %v4074_v12 = vpop.f32.mrb[85].mxu1  ;;  %v2573_v22 = vpack.c.bf16 %v2567_v11, %v2567_v11 }
0x1059   : > { %v2570_v13 = vpop.f32.mrb[86].mxu1  ;;  %4087 = vmatpush3.bf16.msra.mxu0 %v4316_v9 }
0x105a   : > { %v4075_v14 = vpop.f32.mrb[87].mxu1  ;;  %4098 = vmatprep.subr.bf16.mxu0 %v4446_v10 }
0x105c   : > { %4089 = vmatmul.mubr.msk.bf16.vlgmr.msra.gmra.mrb[40].mxu0 %vm334_vm0, %v4588_v23 }
0x105d   : > { %4100 = vmatprep.mubr.msk.bf16.mxu0 %vm4447_vm1, %v4446_v10 }
0x105f   : > { %v2625_v15 = vpop.f32.mrb[88].mxu1 }
0x1060   : > { %v2631_v16 = vpack.c.bf16 %v2625_v15, %v2625_v15  ;;  %v4082_v17 = vpop.f32.mrb[89].mxu1 }
0x1061   : > { %v2628_v18 = vpop.f32.mrb[90].mxu1 }
0x1062   : > { %v2694_v19 = vsel %vm542_vm3, %v2631_v16, 0  ;;  %v4083_v20 = vpop.f32.mrb[91].mxu1 }
0x1063   : > { %4093 = vmatpush3.bf16.xpose.msra.mxu1 %v2694_v19 }
0x1064   : > { %4116 = vmatprep.subr.bf16.mxu1 %v4446_v10 }
0x106a   : > { %4095 = vmatmul.mubr.msk.bf16.vlgmr.msra.gmra.mrb[92].mxu1 %vm542_vm3, %v2573_v22 }
0x106b   : > { %4117 = vmatpush3.bf16.msra.mxu1 %v4317_v21  ;;  %4120 = vmatprep.mubr.msk.bf16.mxu1 %vm4447_vm1, %v4446_v10 }
0x106c   : > { %4118 = vmatprep.subr.bf16.mxu1 %v4446_v10 }
0x106f   : > { %4119 = vmatpush3.bf16.msra.mxu1 %v4318_v24 }
0x1070   : > { %4124 = vmatprep.subr.bf16.mxu1 %v4446_v10 }
0x1072   : > { %4121 = vmatmul.mubr.msk.bf16.vlgmr.msra.gmra.mrb[96].mxu1 %vm334_vm0, %v4588_v23 }
0x1073   : > { %4125 = vmatpush3.bf16.msra.mxu1 %v4319_v25  ;;  %4128 = vmatprep.mubr.msk.bf16.mxu1 %vm4447_vm1, %v4446_v10 }
0x1074   : > { %4126 = vmatprep.subr.bf16.mxu1 %v4446_v10 }
0x1077   : > { %4127 = vmatpush3.bf16.msra.mxu1 %v4320_v26 }
0x1078   : > { %4132 = vmatprep.subr.bf16.mxu1 %v4446_v10 }
0x107a   : > { %4129 = vmatmul.mubr.msk.bf16.vlgmr.msra.gmra.mrb[100].mxu1 %vm334_vm0, %v4588_v23 }
0x107b   : > { %4133 = vmatpush3.bf16.msra.mxu1 %v4321_v27  ;;  %4136 = vmatprep.mubr.msk.bf16.mxu1 %vm4447_vm1, %v4446_v10  ;;  %v4328_v27 = vld [vmem:[%s5193_s6 + $0xe8] sm:$0xff]  }
0x107c   : > { %4134 = vmatprep.subr.bf16.mxu1 %v4446_v10 }
0x107f   : > { %4135 = vmatpush3.bf16.msra.mxu1 %v4322_v28  ;;  %v4329_v28 = vld [vmem:[%s5193_s6 + $0xf0] sm:$0xff]  }
0x1080   : > { %4146 = vmatprep.subr.bf16.mxu1 %v4446_v10 }
0x1082   : > { %4137 = vmatmul.mubr.msk.bf16.vlgmr.msra.gmra.mrb[104].mxu1 %vm334_vm0, %v4588_v23 }
0x1083   : > { %4148 = vmatprep.mubr.msk.bf16.mxu1 %vm4447_vm1, %v4446_v10 }
0x112f   : > { %v2683_v29 = vpop.f32.mrb[40].mxu0 }
0x1130   : > { %v2689_v30 = vpack.c.bf16 %v2683_v29, %v2683_v29  ;;  %v4090_v31 = vpop.f32.mrb[41].mxu0  ;;  %v4330_v29 = vld [vmem:[%s5193_s6 + $0xf8] sm:$0xff]  }
0x1131   : > { %v2686_v32 = vpop.f32.mrb[42].mxu0 }
0x1132   : > { %v2752_v33 = vsel %vm611_vm2, %v2689_v30, 0  ;;  %v4091_v34 = vpop.f32.mrb[43].mxu0  ;;  %v3230_v30 = vld [vmem:[%s329_s30] sm:$0xff] }
0x1133   : > { %4099 = vmatpush3.bf16.msra.mxu0 %v2752_v33  ;;  %vm3231_vm7 = vcmp.gt.f32.partialorder %v3230_v30, 0.0 }
0x1134   : > { %4104 = vmatprep.subr.bf16.mxu0 %v4446_v10  ;;  %v3232_v31 = vsel %vm3231_vm7, 1, %v4445_v0 }
0x113d   : > { %v2730_v35 = vpop.f32.mrb[92].mxu1 }
0x113e   : > { %v2736_v36 = vsel %vm594_vm5, %v2730_v35, -1e+09  ;;  %v4096_v37 = vpop.f32.mrb[93].mxu1 }
0x113f   : > { %v2733_v38 = vpop.f32.mrb[94].mxu1  ;;  %v2737_v23 = vsel %vm596_vm6, %v2736_v36, -inf }
0x1140   : > { %2738 = vmax.xlane.f32.xlu0 %v2737_v23  ;;  %v4097_v39 = vpop.f32.mrb[95].mxu1 }
0x1145   : > { %v2924_v40 = vpop.f32.mrb[96].mxu1 }
0x1146   : > { %v4122_v41 = vpop.f32.mrb[97].mxu1  ;;  %v2930_v13 = vpack.c.bf16 %v2924_v40, %v2924_v40 }
0x1147   : > { %v2927_v42 = vpop.f32.mrb[98].mxu1 }
0x1148   : > { %v4123_v43 = vpop.f32.mrb[99].mxu1 }
0x114d   : > { %v2982_v44 = vpop.f32.mrb[100].mxu1 }
0x114e   : > { %v4130_v45 = vpop.f32.mrb[101].mxu1  ;;  %v2988_v5 = vpack.c.bf16 %v2982_v44, %v2982_v44 }
0x114f   : > { %v2985_v46 = vpop.f32.mrb[102].mxu1 }
0x1150   : > { %v4131_v47 = vpop.f32.mrb[103].mxu1  ;;  %v3051_v12 = vsel %vm542_vm3, %v2988_v5, 0 }
0x1155   : > { %v3040_v48 = vpop.f32.mrb[104].mxu1 }
0x1156   : > { %v3046_v49 = vpack.c.bf16 %v3040_v48, %v3040_v48  ;;  %v4138_v50 = vpop.f32.mrb[105].mxu1 }
0x1157   : > { %v3043_v52 = vpop.f32.mrb[106].mxu1 }
0x1158   : > { %v3109_v53 = vsel %vm611_vm2, %v3046_v49, 0  ;;  %v4139_v54 = vpop.f32.mrb[107].mxu1 }
0x1159   : > { %4147 = vmatpush3.bf16.msra.mxu1 %v3109_v53 }
0x11cd   : > { %v2739_v55 = vpop.xlane.xlu0 %2738 }
0x11ce   : > { %v2740_v56 = vsub.f32 %v2736_v36, %v2739_v55 }
0x11d0   : > { %v2741_v57 = vmul.f32 1.442695, %v2740_v56 }
0x11d2   : > { %4357 = vpow2.f32 %v2741_v57 }
0x11dc   : > { %v4358_v58 = vpop.eup %4357 }
0x11dd   : > { %v2743_v59 = vsel %vm596_vm6, %v4358_v58, 0.0  ;;  %v2747_v60 = vpack.c.bf16 %v4358_v58, %v4358_v58 }
0x11de   : > { %2744 = vadd.xlane.f32.xlu1 %v2743_v59 }
0x11df   : > { %4101 = vmatmul.mubr.msk.bf16.vlgmr.msra.gmra.mrb[44].mxu0 %vm596_vm6, %v2747_v60 }
0x11e0   : > { %4112 = vmatprep.mubr.msk.bf16.mxu0 %vm4447_vm1, %v4446_v10  ;;  %4105 = vmatpush3.bf16.msra.mxu0 %v4323_v61 }
0x11e1   : > { %4106 = vmatprep.subr.bf16.mxu0 %v4446_v10 }
0x11e4   : > { %4107 = vmatpush3.bf16.msra.mxu0 %v4324_v62 }
0x11e5   : > { %4108 = vmatprep.subr.bf16.mxu0 %v4446_v10 }
0x11e8   : > { %4109 = vmatpush3.bf16.msra.mxu0 %v4325_v63 }
0x11e9   : > { %4110 = vmatprep.subr.bf16.mxu0 %v4446_v10 }
0x11ec   : > { %4111 = vmatpush3.bf16.msra.mxu0 %v4326_v1 }
0x11ed   : > { %4140 = vmatprep.subr.bf16.mxu0 %v4446_v10 }
0x126b   : > { %v2745_v2 = vpop.xlane.xlu1 %2744 }
0x126c   : > { %4359 = vrcp.f32 %v2745_v2 }
0x1276   : > { %v4360_v3 = vpop.eup %4359 }
0x12b2   : > { %v2788_v4 = vpop.f32.mrb[44].mxu0 }
0x12b3   : > { %v2794_v6 = vmul.f32 %v4360_v3, %v2788_v4  ;;  %v4102_v7 = vpop.f32.mrb[45].mxu0 }
0x12b4   : > { %v2791_v8 = vpop.f32.mrb[46].mxu0 }
0x12b5   : > { %v2795_v9 = vpack.c.bf16 %v2794_v6, %v2794_v6  ;;  %v4103_v11 = vpop.f32.mrb[47].mxu0 }
0x12b7   : > { %4113 = vmatmul.mubr.msk.bf16.vlgmr.msra.gmra.mrb[16].mxu0 %vm542_vm3, %v2795_v9 }
0x12b8   : > { %4141 = vmatpush3.bf16.xpose.msra.mxu0 %v3051_v12  ;;  %4142 = vmatprep.mubr.msk.bf16.mxu0 %vm4447_vm1, %v4446_v10 }
0x12b9   : > { %4152 = vmatprep.subr.bf16.mxu0 %v4446_v10 }
0x12bf   : > { %4143 = vmatmul.mubr.msk.bf16.vlgmr.msra.gmra.mrb[48].mxu0 %vm542_vm3, %v2930_v13 }
0x12c0   : > { %4160 = vmatprep.mubr.msk.bf16.mxu0 %vm4447_vm1, %v4446_v10  ;;  %4153 = vmatpush3.bf16.msra.mxu0 %v4327_v51 }
0x12c1   : > { %4154 = vmatprep.subr.bf16.mxu0 %v4446_v10 }
0x12c4   : > { %4155 = vmatpush3.bf16.msra.mxu0 %v4328_v27 }
0x12c5   : > { %4156 = vmatprep.subr.bf16.mxu0 %v4446_v10 }
0x12c8   : > { %4157 = vmatpush3.bf16.msra.mxu0 %v4329_v28 }
0x12c9   : > { %4158 = vmatprep.subr.bf16.mxu0 %v4446_v10 }
0x12cc   : > { %4159 = vmatpush3.bf16.msra.mxu0 %v4330_v29 }
0x1392   : > { %v3087_v14 = vpop.f32.mrb[48].mxu0 }
0x1393   : > { %v3093_v15 = vsel %vm594_vm5, %v3087_v14, -1e+09  ;;  %v4144_v16 = vpop.f32.mrb[49].mxu0 }
0x1394   : > { %v3090_v17 = vpop.f32.mrb[50].mxu0  ;;  %v3094_v18 = vsel %vm596_vm6, %v3093_v15, -inf }
0x1395   : > { %3095 = vmax.xlane.f32.xlu0 %v3094_v18  ;;  %v4145_v19 = vpop.f32.mrb[51].mxu0 }
0x13ab   : > { %3234 = vperm.xlu0 %4250, %v3232_v31  }
0x1422   : > { %v3096_v20 = vpop.xlane.xlu0 %3095 }
0x1423   : > { %v3097_v21 = vsub.f32 %v3093_v15, %v3096_v20 }
0x1425   : > { %v3098_v22 = vmul.f32 1.442695, %v3097_v21 }
0x1427   : > { %4361 = vpow2.f32 %v3098_v22 }
0x142a   : > { %v3235_v23 = vpop.permute.xlu0 %3234 }
0x142b   : > { %vm3236_vm8 = vcmp.eq.s32.totalorder %v3235_v23, 1 }
0x1431   : > { %v4362_v24 = vpop.eup %4361 }
0x1432   : > { %v3100_v25 = vsel %vm596_vm6, %v4362_v24, 0.0  ;;  %v3104_v26 = vpack.c.bf16 %v4362_v24, %v4362_v24 }
0x1433   : > { %3101 = vadd.xlane.f32.xlu1 %v3100_v25 }
0x1434   : > { %4149 = vmatmul.mubr.msk.bf16.vlgmr.msra.gmra.mrb[108].mxu1 %vm596_vm6, %v3104_v26 }
0x14c0   : > { %v3102_v32 = vpop.xlane.xlu1 %3101 }
0x14c1   : > { %4363 = vrcp.f32 %v3102_v32 }
0x14cb   : > { %v4364_v10 = vpop.eup %4363 }
0x1507   : > { %v3145_v33 = vpop.f32.mrb[108].mxu1 }
0x1508   : > { %v3151_v34 = vmul.f32 %v4364_v10, %v3145_v33  ;;  %v4150_v35 = vpop.f32.mrb[109].mxu1 }
0x1509   : > { %v3148_v36 = vpop.f32.mrb[110].mxu1 }
0x150a   : > { %v3152_v37 = vpack.c.bf16 %v3151_v34, %v3151_v34  ;;  %v4151_v38 = vpop.f32.mrb[111].mxu1 }
0x150c   : > { %4161 = vmatmul.mubr.msk.bf16.vlgmr.msra.gmra.mrb[16].mxu0 %vm542_vm3, %v3152_v37 }
0x15df   : > { %v3223_v0 = vpop.f32.mrb[16].mxu0 }
0x15e0   : > { %v3237_v39 = vsel %vm3236_vm8, %v3223_v0, 0.0  ;;  %v4162_v40 = vpop.f32.mrb[17].mxu0 }
0x15e1   : > { %3238 = vst.msk [vmem:[%s315_s10] sm:$0xff] %vm334_vm0, %v3237_v39  ;;  %v3226_v41 = vpop.f32.mrb[18].mxu0 }
0x15e2   : > { %v4163_v42 = vpop.f32.mrb[19].mxu0 }
0x15e3   : > { %4378 = shalt.err (!%p4375_p5)
}
0x15e4   : > { %s4379_s30 = scalar_lea.hbm %s5139_s19, 128  ;;  %s4383_s8 = scalar_lea.hbm %s5194_s7, 256 }
0x15e5   : > { %p4380_p6 = scmp.ne.s32.totalorder %s5139_s19, %s4379_s30  ;;  %p4384_p10 = scmp.lt.u32.totalorder %s5139_s19, %s5194_s7 }
0x15e6   : > { %p4385_p11 = scmp.lt.u32.totalorder %s4383_s8, %s4379_s30  ;;  %p4387_p13 = scmp.lt.u32.totalorder %s4379_s30, %s5139_s19 }
0x15e7   : > { %p4381_p7 = pnand %p4380_p6, %p4529_p4 }
0x15e8   : > { %p4386_p12 = por %p4385_p11, %p4384_p10 }
0x15e9   : > { %p4382_p9 = pneg %p4381_p7 }
0x15ea   : > { %p4388_p0 = por %p4387_p13, %p4386_p12 }
0x15ec   : > { %p4389_p1 = pnand %p4388_p0, %p4382_p9 }
0x15ee   : > { %4392 = shalt.err (!%p4389_p1)
}
0x15ef   : > { %4192 = dma.vmem_to_hbm [thread:$0]  (%p4529_p4), %s5141_s12, 128, %s5139_s19, %s3240_s27  }
0x15f0 PF: > { %p4198_p2 = scmp.ge.s32.totalorder %s4443_s29, 2  ;;  %s3266_s18 = sand.u32 1, %s4423_s24  }
0x15f1   : > { %s3267_s20 = scalar_lea.sflag [#allocation3], %s3266_s18 }
0x15f2   : > { %p4195_p3 = pnand %p4198_p2, %p4536_p8 }
0x15f4   : > { %4418 = dma.done.wait (!%p4195_p3), %s3267_s20, 128  }
0x15f5   : > { %4420 = vsyncadd (!%p4195_p3), %s3267_s20, 4294967168  ;;  %s20_s29 = sadd.s32 1, %s4443_s29   ;;  %s5197_s24 = smov %s4427_s25 }
0x15f6   : > { %p17_p5 = scmp.ge.s32.totalorder %s20_s29, 4   ;;  %s5198_s25 = smov %s4431_s26 }
0x15f7   : > { %s5199_s26 = smov %s4542_s14  ;;  %s5200_s27 = smov %s4439_s28 }
0x15f8   : > { %s5201_s28 = smov %s5203_s9  ;;  %19 = sbr.rel (!%p17_p5) target bundleno = 4 (0x4), region = 119 }
0x15ff   :  { %3272 = vsyncpa [#allocation3], 1 }
0x1600   :  { %3274 = vsyncpa [#allocation3 + $0x1], 1 }

</bundles_post_ra>
